<compile_context>
chip_gen: v7x
topology: tpu7x:2x2x1
jax: 0.10.0
libtpu: 0.0.40
codegen_flags: <defaults>
</compile_context>

<pallas_src>
import jax
import jax.numpy as jnp
import numpy as np
from jax.experimental import pallas as pl
from jax.experimental.pallas import tpu as pltpu


def _make_reslt_kernel(W):
    """Builds the fused-block kernel for images whose rows are W pixels wide."""

    def kernel(x_ref, mask_ref, w1_ref, w2_ref,
               g1_ref, b1_ref, g2_ref, b2_ref, o_ref):
        N, C, HW = x_ref.shape
        eps = 1e-5
        inv_count = 1.0 / float(N * HW)

        x = x_ref[...].astype(jnp.float32)                 # (N, C, HW)

        def conv3x3(y, w_ref):
            # y: (N, Cin, HW); w_ref: (9, Cout, Cin); mask_ref: (9, 1, HW).
            # Tap shift = lane roll (XLU slot), border zeroing = mask multiply
            # (VPU), channel contraction = MXU matmul.
            outs = []
            for n in range(N):
                yn = y[n]                                   # (Cin, HW)
                acc = None
                for t in range(9):
                    dh, dw = t // 3 - 1, t % 3 - 1
                    shift = (-(dh * W + dw)) % HW
                    src = yn if shift == 0 else pltpu.roll(yn, shift, axis=1)
                    if dh != 0 or dw != 0:
                        src = src * mask_ref[t]             # (1, HW) broadcast
                    contrib = jnp.dot(w_ref[t], src,
                                      preferred_element_type=jnp.float32)
                    acc = contrib if acc is None else acc + contrib
                outs.append(acc)                            # (Cout, HW)
            return jnp.stack(outs, axis=0)                  # (N, Cout, HW)

        def batchnorm(y, g_ref, b_ref):
            # Single pass: sum and sum-of-squares, var = E[y^2] - mean^2.
            s = jnp.sum(jnp.sum(y, axis=2, keepdims=True),
                        axis=0, keepdims=True)              # (1, C, 1)
            s2 = jnp.sum(jnp.sum(y * y, axis=2, keepdims=True),
                         axis=0, keepdims=True)             # (1, C, 1)
            mean = s * inv_count
            var = s2 * inv_count - mean * mean
            return ((y - mean) * jax.lax.rsqrt(var + eps)
                    * g_ref[...] + b_ref[...])

        # conv1 -> bn1 -> relu
        h1 = jnp.maximum(batchnorm(conv3x3(x, w1_ref), g1_ref, b1_ref), 0.0)
        # conv2 -> bn2
        h2 = batchnorm(conv3x3(h1, w2_ref), g2_ref, b2_ref)
        # identity shortcut + final relu (lane-dense store: last dim = H*W)
        o_ref[...] = jnp.maximum(h2 + x, 0.0).astype(o_ref.dtype)

    return kernel


def _border_masks(H, W):
    """(9, 1, H*W) f32 masks: 1 where the tap's source pixel is in-bounds."""
    m = np.zeros((9, H, W), np.float32)
    for kh in range(3):
        for kw in range(3):
            dh, dw = kh - 1, kw - 1
            h0, h1 = max(-dh, 0), H - max(dh, 0)
            w0, w1 = max(-dw, 0), W - max(dw, 0)
            m[kh * 3 + kw, h0:h1, w0:w1] = 1.0
    return jnp.asarray(m.reshape(9, 1, H * W))


def basic_block_reslt(x_nchw, w1_oihw, w2_oihw, g1, b1, g2, b2):
    """BasicBlock_ResLT forward (stride=1, in_planes == out_planes)."""
    N, C, H, W = x_nchw.shape
    assert w1_oihw.shape == (C, C, 3, 3) and w2_oihw.shape == (C, C, 3, 3)
    HW = H * W

    # NCHW -> (N, C, H*W) is a free reshape (no transpose round-trip in HBM).
    x = x_nchw.reshape(N, C, HW).astype(jnp.float32)
    masks = _border_masks(H, W)
    # PyTorch OIHW -> (tap, Cout, Cin) for the per-tap MXU contraction.
    w1k = jnp.transpose(w1_oihw, (2, 3, 0, 1)).reshape(9, C, C).astype(jnp.float32)
    w2k = jnp.transpose(w2_oihw, (2, 3, 0, 1)).reshape(9, C, C).astype(jnp.float32)
    g1r, b1r, g2r, b2r = (jnp.reshape(p, (1, C, 1)).astype(jnp.float32)
                          for p in (g1, b1, g2, b2))

    def full(shape):
        n = len(shape)
        return pl.BlockSpec(shape, lambda i: (0,) * n)

    out = pl.pallas_call(
        _make_reslt_kernel(W),
        out_shape=jax.ShapeDtypeStruct((N, C, HW), jnp.float32),
        grid=(1,),
        in_specs=[full((N, C, HW)), full((9, 1, HW)),
                  full((9, C, C)), full((9, C, C)),
                  full((1, C, 1)), full((1, C, 1)),
                  full((1, C, 1)), full((1, C, 1))],
        out_specs=full((N, C, HW)),
        compiler_params=pltpu.CompilerParams(
            dimension_semantics=("arbitrary",)),
    )(x, masks, w1k, w2k, g1r, b1r, g2r, b2r)

    return out.reshape(N, C, H, W)


def _reference(x, w1, w2, g1, b1, g2, b2):
    """Pure-JAX replica of the PyTorch forward (NCHW), for verification."""
    def conv(y, w):
        return jax.lax.conv_general_dilated(
            y, w, window_strides=(1, 1), padding=((1, 1), (1, 1)),
            dimension_numbers=("NCHW", "OIHW", "NCHW"))

    def bn(y, g, b):
        mean = jnp.mean(y, axis=(0, 2, 3), keepdims=True)
        var = jnp.mean((y - mean) ** 2, axis=(0, 2, 3), keepdims=True)
        return ((y - mean) * jax.lax.rsqrt(var + 1e-5)
                * g.reshape(1, -1, 1, 1) + b.reshape(1, -1, 1, 1))

    h = jax.nn.relu(bn(conv(x, w1), g1, b1))
    h = bn(conv(h, w2), g2, b2)
    return jax.nn.relu(h + x)


if __name__ == "__main__":
    key = jax.random.PRNGKey(0)
    k1, k2, kx = jax.random.split(key, 3)

    N, C, H, W = 2, 4, 16, 16                      # in_planes == out_planes == 4
    bound = 1.0 / np.sqrt(C * 3 * 3)               # kaiming-uniform-style bound
    w1 = jax.random.uniform(k1, (C, C, 3, 3), jnp.float32, -bound, bound)
    w2 = jax.random.uniform(k2, (C, C, 3, 3), jnp.float32, -bound, bound)
    g1 = jnp.ones((C,), jnp.float32)               # BatchNorm default init
    b1 = jnp.zeros((C,), jnp.float32)
    g2 = jnp.ones((C,), jnp.float32)
    b2 = jnp.zeros((C,), jnp.float32)
    x = jax.random.normal(kx, (N, C, H, W), jnp.float32)

    out = jax.block_until_ready(basic_block_reslt(x, w1, w2, g1, b1, g2, b2))
    ref = jax.block_until_ready(_reference(x, w1, w2, g1, b1, g2, b2))

    assert out.shape == (N, C, H, W)
    np.testing.assert_allclose(np.asarray(out), np.asarray(ref),
                               rtol=1e-3, atol=1e-3)
    print("KERNEL_OK")
</pallas_src>

<mosaic_0001>
module attributes {stable_mosaic.version = 11 : i64} {
  func.func @kernel(%arg0: i32, %arg1: memref<2x4x256xf32, #tpu.memory_space<vmem>>, %arg2: memref<9x1x256xf32, #tpu.memory_space<vmem>>, %arg3: memref<9x4x4xf32, #tpu.memory_space<vmem>>, %arg4: memref<9x4x4xf32, #tpu.memory_space<vmem>>, %arg5: memref<1x4x1xf32, #tpu.memory_space<vmem>>, %arg6: memref<1x4x1xf32, #tpu.memory_space<vmem>>, %arg7: memref<1x4x1xf32, #tpu.memory_space<vmem>>, %arg8: memref<1x4x1xf32, #tpu.memory_space<vmem>>, %arg9: memref<2x4x256xf32, #tpu.memory_space<vmem>>) attributes {dimension_semantics = [#tpu.dimension_semantics<arbitrary>], iteration_bounds = array<i64: 1>, scalar_prefetch = 0 : i64, scratch_operands = 0 : i64, tpu.core_type = #tpu.core_type<tc>, window_params = [{pipeline_mode = #tpu.pipeline_mode<synchronous>, transform_indices = @transform_0, window_bounds = array<i64: 2, 4, 256>}, {pipeline_mode = #tpu.pipeline_mode<synchronous>, transform_indices = @transform_1, window_bounds = array<i64: 9, 1, 256>}, {pipeline_mode = #tpu.pipeline_mode<synchronous>, transform_indices = @transform_2, window_bounds = array<i64: 9, 4, 4>}, {pipeline_mode = #tpu.pipeline_mode<synchronous>, transform_indices = @transform_3, window_bounds = array<i64: 9, 4, 4>}, {pipeline_mode = #tpu.pipeline_mode<synchronous>, transform_indices = @transform_4, window_bounds = array<i64: 1, 4, 1>}, {pipeline_mode = #tpu.pipeline_mode<synchronous>, transform_indices = @transform_5, window_bounds = array<i64: 1, 4, 1>}, {pipeline_mode = #tpu.pipeline_mode<synchronous>, transform_indices = @transform_6, window_bounds = array<i64: 1, 4, 1>}, {pipeline_mode = #tpu.pipeline_mode<synchronous>, transform_indices = @transform_7, window_bounds = array<i64: 1, 4, 1>}, {pipeline_mode = #tpu.pipeline_mode<synchronous>, transform_indices = @transform_8, window_bounds = array<i64: 2, 4, 256>}]} {
    %c0 = arith.constant 0 : index
    %c0_0 = arith.constant 0 : index
    %c0_1 = arith.constant 0 : index
    %0 = vector.load %arg1[%c0, %c0_0, %c0_1] : memref<2x4x256xf32, #tpu.memory_space<vmem>>, vector<2x4x256xf32>
    %1 = vector.extract_strided_slice %0 {offsets = [0, 0, 0], sizes = [1, 4, 256], strides = [1, 1, 1]} : vector<2x4x256xf32> to vector<1x4x256xf32>
    %2 = vector.shape_cast %1 : vector<1x4x256xf32> to vector<4x256xf32>
    %c17_i32 = arith.constant 17 : i32
    %3 = tpu.dynamic_rotate %2 by %c17_i32 dim 1 : vector<4x256xf32>, i32 -> vector<4x256xf32>
    %c0_2 = arith.constant 0 : index
    %c0_3 = arith.constant 0 : index
    %c0_4 = arith.constant 0 : index
    %4 = vector.load %arg2[%c0_2, %c0_3, %c0_4] : memref<9x1x256xf32, #tpu.memory_space<vmem>>, vector<1x1x256xf32>
    %5 = vector.shape_cast %4 : vector<1x1x256xf32> to vector<1x256xf32>
    %6 = vector.broadcast %5 : vector<1x256xf32> to vector<4x256xf32>
    %7 = arith.mulf %3, %6 : vector<4x256xf32>
    %c0_5 = arith.constant 0 : index
    %c0_6 = arith.constant 0 : index
    %c0_7 = arith.constant 0 : index
    %8 = vector.load %arg3[%c0_5, %c0_6, %c0_7] : memref<9x4x4xf32, #tpu.memory_space<vmem>>, vector<1x4x4xf32>
    %9 = vector.shape_cast %8 : vector<1x4x4xf32> to vector<4x4xf32>
    %cst = arith.constant dense<0.000000e+00> : vector<4x256xf32>
    %10 = tpu.matmul %9, %7, %cst {dimension_numbers = #tpu.dot_dimension_numbers<[1], [0], [0], [1], [0, 0, 1, 1], [], []>} : vector<4x4xf32>, vector<4x256xf32>, vector<4x256xf32> -> vector<4x256xf32>
    %c16_i32 = arith.constant 16 : i32
    %11 = tpu.dynamic_rotate %2 by %c16_i32 dim 1 : vector<4x256xf32>, i32 -> vector<4x256xf32>
    %c1 = arith.constant 1 : index
    %c0_8 = arith.constant 0 : index
    %c0_9 = arith.constant 0 : index
    %12 = vector.load %arg2[%c1, %c0_8, %c0_9] : memref<9x1x256xf32, #tpu.memory_space<vmem>>, vector<1x1x256xf32>
    %13 = vector.shape_cast %12 : vector<1x1x256xf32> to vector<1x256xf32>
    %14 = vector.broadcast %13 : vector<1x256xf32> to vector<4x256xf32>
    %15 = arith.mulf %11, %14 : vector<4x256xf32>
    %c1_10 = arith.constant 1 : index
    %c0_11 = arith.constant 0 : index
    %c0_12 = arith.constant 0 : index
    %16 = vector.load %arg3[%c1_10, %c0_11, %c0_12] : memref<9x4x4xf32, #tpu.memory_space<vmem>>, vector<1x4x4xf32>
    %17 = vector.shape_cast %16 : vector<1x4x4xf32> to vector<4x4xf32>
    %cst_13 = arith.constant dense<0.000000e+00> : vector<4x256xf32>
    %18 = tpu.matmul %17, %15, %cst_13 {dimension_numbers = #tpu.dot_dimension_numbers<[1], [0], [0], [1], [0, 0, 1, 1], [], []>} : vector<4x4xf32>, vector<4x256xf32>, vector<4x256xf32> -> vector<4x256xf32>
    %19 = arith.addf %10, %18 : vector<4x256xf32>
    %c15_i32 = arith.constant 15 : i32
    %20 = tpu.dynamic_rotate %2 by %c15_i32 dim 1 : vector<4x256xf32>, i32 -> vector<4x256xf32>
    %c2 = arith.constant 2 : index
    %c0_14 = arith.constant 0 : index
    %c0_15 = arith.constant 0 : index
    %21 = vector.load %arg2[%c2, %c0_14, %c0_15] : memref<9x1x256xf32, #tpu.memory_space<vmem>>, vector<1x1x256xf32>
    %22 = vector.shape_cast %21 : vector<1x1x256xf32> to vector<1x256xf32>
    %23 = vector.broadcast %22 : vector<1x256xf32> to vector<4x256xf32>
    %24 = arith.mulf %20, %23 : vector<4x256xf32>
    %c2_16 = arith.constant 2 : index
    %c0_17 = arith.constant 0 : index
    %c0_18 = arith.constant 0 : index
    %25 = vector.load %arg3[%c2_16, %c0_17, %c0_18] : memref<9x4x4xf32, #tpu.memory_space<vmem>>, vector<1x4x4xf32>
    %26 = vector.shape_cast %25 : vector<1x4x4xf32> to vector<4x4xf32>
    %cst_19 = arith.constant dense<0.000000e+00> : vector<4x256xf32>
    %27 = tpu.matmul %26, %24, %cst_19 {dimension_numbers = #tpu.dot_dimension_numbers<[1], [0], [0], [1], [0, 0, 1, 1], [], []>} : vector<4x4xf32>, vector<4x256xf32>, vector<4x256xf32> -> vector<4x256xf32>
    %28 = arith.addf %19, %27 : vector<4x256xf32>
    %c1_i32 = arith.constant 1 : i32
    %29 = tpu.dynamic_rotate %2 by %c1_i32 dim 1 : vector<4x256xf32>, i32 -> vector<4x256xf32>
    %c3 = arith.constant 3 : index
    %c0_20 = arith.constant 0 : index
    %c0_21 = arith.constant 0 : index
    %30 = vector.load %arg2[%c3, %c0_20, %c0_21] : memref<9x1x256xf32, #tpu.memory_space<vmem>>, vector<1x1x256xf32>
    %31 = vector.shape_cast %30 : vector<1x1x256xf32> to vector<1x256xf32>
    %32 = vector.broadcast %31 : vector<1x256xf32> to vector<4x256xf32>
    %33 = arith.mulf %29, %32 : vector<4x256xf32>
    %c3_22 = arith.constant 3 : index
    %c0_23 = arith.constant 0 : index
    %c0_24 = arith.constant 0 : index
    %34 = vector.load %arg3[%c3_22, %c0_23, %c0_24] : memref<9x4x4xf32, #tpu.memory_space<vmem>>, vector<1x4x4xf32>
    %35 = vector.shape_cast %34 : vector<1x4x4xf32> to vector<4x4xf32>
    %cst_25 = arith.constant dense<0.000000e+00> : vector<4x256xf32>
    %36 = tpu.matmul %35, %33, %cst_25 {dimension_numbers = #tpu.dot_dimension_numbers<[1], [0], [0], [1], [0, 0, 1, 1], [], []>} : vector<4x4xf32>, vector<4x256xf32>, vector<4x256xf32> -> vector<4x256xf32>
    %37 = arith.addf %28, %36 : vector<4x256xf32>
    %c4 = arith.constant 4 : index
    %c0_26 = arith.constant 0 : index
    %c0_27 = arith.constant 0 : index
    %38 = vector.load %arg3[%c4, %c0_26, %c0_27] : memref<9x4x4xf32, #tpu.memory_space<vmem>>, vector<1x4x4xf32>
    %39 = vector.shape_cast %38 : vector<1x4x4xf32> to vector<4x4xf32>
    %cst_28 = arith.constant dense<0.000000e+00> : vector<4x256xf32>
    %40 = tpu.matmul %39, %2, %cst_28 {dimension_numbers = #tpu.dot_dimension_numbers<[1], [0], [0], [1], [0, 0, 1, 1], [], []>} : vector<4x4xf32>, vector<4x256xf32>, vector<4x256xf32> -> vector<4x256xf32>
    %41 = arith.addf %37, %40 : vector<4x256xf32>
    %c255_i32 = arith.constant 255 : i32
    %42 = tpu.dynamic_rotate %2 by %c255_i32 dim 1 : vector<4x256xf32>, i32 -> vector<4x256xf32>
    %c5 = arith.constant 5 : index
    %c0_29 = arith.constant 0 : index
    %c0_30 = arith.constant 0 : index
    %43 = vector.load %arg2[%c5, %c0_29, %c0_30] : memref<9x1x256xf32, #tpu.memory_space<vmem>>, vector<1x1x256xf32>
    %44 = vector.shape_cast %43 : vector<1x1x256xf32> to vector<1x256xf32>
    %45 = vector.broadcast %44 : vector<1x256xf32> to vector<4x256xf32>
    %46 = arith.mulf %42, %45 : vector<4x256xf32>
    %c5_31 = arith.constant 5 : index
    %c0_32 = arith.constant 0 : index
    %c0_33 = arith.constant 0 : index
    %47 = vector.load %arg3[%c5_31, %c0_32, %c0_33] : memref<9x4x4xf32, #tpu.memory_space<vmem>>, vector<1x4x4xf32>
    %48 = vector.shape_cast %47 : vector<1x4x4xf32> to vector<4x4xf32>
    %cst_34 = arith.constant dense<0.000000e+00> : vector<4x256xf32>
    %49 = tpu.matmul %48, %46, %cst_34 {dimension_numbers = #tpu.dot_dimension_numbers<[1], [0], [0], [1], [0, 0, 1, 1], [], []>} : vector<4x4xf32>, vector<4x256xf32>, vector<4x256xf32> -> vector<4x256xf32>
    %50 = arith.addf %41, %49 : vector<4x256xf32>
    %c241_i32 = arith.constant 241 : i32
    %51 = tpu.dynamic_rotate %2 by %c241_i32 dim 1 : vector<4x256xf32>, i32 -> vector<4x256xf32>
    %c6 = arith.constant 6 : index
    %c0_35 = arith.constant 0 : index
    %c0_36 = arith.constant 0 : index
    %52 = vector.load %arg2[%c6, %c0_35, %c0_36] : memref<9x1x256xf32, #tpu.memory_space<vmem>>, vector<1x1x256xf32>
    %53 = vector.shape_cast %52 : vector<1x1x256xf32> to vector<1x256xf32>
    %54 = vector.broadcast %53 : vector<1x256xf32> to vector<4x256xf32>
    %55 = arith.mulf %51, %54 : vector<4x256xf32>
    %c6_37 = arith.constant 6 : index
    %c0_38 = arith.constant 0 : index
    %c0_39 = arith.constant 0 : index
    %56 = vector.load %arg3[%c6_37, %c0_38, %c0_39] : memref<9x4x4xf32, #tpu.memory_space<vmem>>, vector<1x4x4xf32>
    %57 = vector.shape_cast %56 : vector<1x4x4xf32> to vector<4x4xf32>
    %cst_40 = arith.constant dense<0.000000e+00> : vector<4x256xf32>
    %58 = tpu.matmul %57, %55, %cst_40 {dimension_numbers = #tpu.dot_dimension_numbers<[1], [0], [0], [1], [0, 0, 1, 1], [], []>} : vector<4x4xf32>, vector<4x256xf32>, vector<4x256xf32> -> vector<4x256xf32>
    %59 = arith.addf %50, %58 : vector<4x256xf32>
    %c240_i32 = arith.constant 240 : i32
    %60 = tpu.dynamic_rotate %2 by %c240_i32 dim 1 : vector<4x256xf32>, i32 -> vector<4x256xf32>
    %c7 = arith.constant 7 : index
    %c0_41 = arith.constant 0 : index
    %c0_42 = arith.constant 0 : index
    %61 = vector.load %arg2[%c7, %c0_41, %c0_42] : memref<9x1x256xf32, #tpu.memory_space<vmem>>, vector<1x1x256xf32>
    %62 = vector.shape_cast %61 : vector<1x1x256xf32> to vector<1x256xf32>
    %63 = vector.broadcast %62 : vector<1x256xf32> to vector<4x256xf32>
    %64 = arith.mulf %60, %63 : vector<4x256xf32>
    %c7_43 = arith.constant 7 : index
    %c0_44 = arith.constant 0 : index
    %c0_45 = arith.constant 0 : index
    %65 = vector.load %arg3[%c7_43, %c0_44, %c0_45] : memref<9x4x4xf32, #tpu.memory_space<vmem>>, vector<1x4x4xf32>
    %66 = vector.shape_cast %65 : vector<1x4x4xf32> to vector<4x4xf32>
    %cst_46 = arith.constant dense<0.000000e+00> : vector<4x256xf32>
    %67 = tpu.matmul %66, %64, %cst_46 {dimension_numbers = #tpu.dot_dimension_numbers<[1], [0], [0], [1], [0, 0, 1, 1], [], []>} : vector<4x4xf32>, vector<4x256xf32>, vector<4x256xf32> -> vector<4x256xf32>
    %68 = arith.addf %59, %67 : vector<4x256xf32>
    %c239_i32 = arith.constant 239 : i32
    %69 = tpu.dynamic_rotate %2 by %c239_i32 dim 1 : vector<4x256xf32>, i32 -> vector<4x256xf32>
    %c8 = arith.constant 8 : index
    %c0_47 = arith.constant 0 : index
    %c0_48 = arith.constant 0 : index
    %70 = vector.load %arg2[%c8, %c0_47, %c0_48] : memref<9x1x256xf32, #tpu.memory_space<vmem>>, vector<1x1x256xf32>
    %71 = vector.shape_cast %70 : vector<1x1x256xf32> to vector<1x256xf32>
    %72 = vector.broadcast %71 : vector<1x256xf32> to vector<4x256xf32>
    %73 = arith.mulf %69, %72 : vector<4x256xf32>
    %c8_49 = arith.constant 8 : index
    %c0_50 = arith.constant 0 : index
    %c0_51 = arith.constant 0 : index
    %74 = vector.load %arg3[%c8_49, %c0_50, %c0_51] : memref<9x4x4xf32, #tpu.memory_space<vmem>>, vector<1x4x4xf32>
    %75 = vector.shape_cast %74 : vector<1x4x4xf32> to vector<4x4xf32>
    %cst_52 = arith.constant dense<0.000000e+00> : vector<4x256xf32>
    %76 = tpu.matmul %75, %73, %cst_52 {dimension_numbers = #tpu.dot_dimension_numbers<[1], [0], [0], [1], [0, 0, 1, 1], [], []>} : vector<4x4xf32>, vector<4x256xf32>, vector<4x256xf32> -> vector<4x256xf32>
    %77 = arith.addf %68, %76 : vector<4x256xf32>
    %78 = vector.extract_strided_slice %0 {offsets = [1, 0, 0], sizes = [1, 4, 256], strides = [1, 1, 1]} : vector<2x4x256xf32> to vector<1x4x256xf32>
    %79 = vector.shape_cast %78 : vector<1x4x256xf32> to vector<4x256xf32>
    %c17_i32_53 = arith.constant 17 : i32
    %80 = tpu.dynamic_rotate %79 by %c17_i32_53 dim 1 : vector<4x256xf32>, i32 -> vector<4x256xf32>
    %c0_54 = arith.constant 0 : index
    %c0_55 = arith.constant 0 : index
    %c0_56 = arith.constant 0 : index
    %81 = vector.load %arg2[%c0_54, %c0_55, %c0_56] : memref<9x1x256xf32, #tpu.memory_space<vmem>>, vector<1x1x256xf32>
    %82 = vector.shape_cast %81 : vector<1x1x256xf32> to vector<1x256xf32>
    %83 = vector.broadcast %82 : vector<1x256xf32> to vector<4x256xf32>
    %84 = arith.mulf %80, %83 : vector<4x256xf32>
    %c0_57 = arith.constant 0 : index
    %c0_58 = arith.constant 0 : index
    %c0_59 = arith.constant 0 : index
    %85 = vector.load %arg3[%c0_57, %c0_58, %c0_59] : memref<9x4x4xf32, #tpu.memory_space<vmem>>, vector<1x4x4xf32>
    %86 = vector.shape_cast %85 : vector<1x4x4xf32> to vector<4x4xf32>
    %cst_60 = arith.constant dense<0.000000e+00> : vector<4x256xf32>
    %87 = tpu.matmul %86, %84, %cst_60 {dimension_numbers = #tpu.dot_dimension_numbers<[1], [0], [0], [1], [0, 0, 1, 1], [], []>} : vector<4x4xf32>, vector<4x256xf32>, vector<4x256xf32> -> vector<4x256xf32>
    %c16_i32_61 = arith.constant 16 : i32
    %88 = tpu.dynamic_rotate %79 by %c16_i32_61 dim 1 : vector<4x256xf32>, i32 -> vector<4x256xf32>
    %c1_62 = arith.constant 1 : index
    %c0_63 = arith.constant 0 : index
    %c0_64 = arith.constant 0 : index
    %89 = vector.load %arg2[%c1_62, %c0_63, %c0_64] : memref<9x1x256xf32, #tpu.memory_space<vmem>>, vector<1x1x256xf32>
    %90 = vector.shape_cast %89 : vector<1x1x256xf32> to vector<1x256xf32>
    %91 = vector.broadcast %90 : vector<1x256xf32> to vector<4x256xf32>
    %92 = arith.mulf %88, %91 : vector<4x256xf32>
    %c1_65 = arith.constant 1 : index
    %c0_66 = arith.constant 0 : index
    %c0_67 = arith.constant 0 : index
    %93 = vector.load %arg3[%c1_65, %c0_66, %c0_67] : memref<9x4x4xf32, #tpu.memory_space<vmem>>, vector<1x4x4xf32>
    %94 = vector.shape_cast %93 : vector<1x4x4xf32> to vector<4x4xf32>
    %cst_68 = arith.constant dense<0.000000e+00> : vector<4x256xf32>
    %95 = tpu.matmul %94, %92, %cst_68 {dimension_numbers = #tpu.dot_dimension_numbers<[1], [0], [0], [1], [0, 0, 1, 1], [], []>} : vector<4x4xf32>, vector<4x256xf32>, vector<4x256xf32> -> vector<4x256xf32>
    %96 = arith.addf %87, %95 : vector<4x256xf32>
    %c15_i32_69 = arith.constant 15 : i32
    %97 = tpu.dynamic_rotate %79 by %c15_i32_69 dim 1 : vector<4x256xf32>, i32 -> vector<4x256xf32>
    %c2_70 = arith.constant 2 : index
    %c0_71 = arith.constant 0 : index
    %c0_72 = arith.constant 0 : index
    %98 = vector.load %arg2[%c2_70, %c0_71, %c0_72] : memref<9x1x256xf32, #tpu.memory_space<vmem>>, vector<1x1x256xf32>
    %99 = vector.shape_cast %98 : vector<1x1x256xf32> to vector<1x256xf32>
    %100 = vector.broadcast %99 : vector<1x256xf32> to vector<4x256xf32>
    %101 = arith.mulf %97, %100 : vector<4x256xf32>
    %c2_73 = arith.constant 2 : index
    %c0_74 = arith.constant 0 : index
    %c0_75 = arith.constant 0 : index
    %102 = vector.load %arg3[%c2_73, %c0_74, %c0_75] : memref<9x4x4xf32, #tpu.memory_space<vmem>>, vector<1x4x4xf32>
    %103 = vector.shape_cast %102 : vector<1x4x4xf32> to vector<4x4xf32>
    %cst_76 = arith.constant dense<0.000000e+00> : vector<4x256xf32>
    %104 = tpu.matmul %103, %101, %cst_76 {dimension_numbers = #tpu.dot_dimension_numbers<[1], [0], [0], [1], [0, 0, 1, 1], [], []>} : vector<4x4xf32>, vector<4x256xf32>, vector<4x256xf32> -> vector<4x256xf32>
    %105 = arith.addf %96, %104 : vector<4x256xf32>
    %c1_i32_77 = arith.constant 1 : i32
    %106 = tpu.dynamic_rotate %79 by %c1_i32_77 dim 1 : vector<4x256xf32>, i32 -> vector<4x256xf32>
    %c3_78 = arith.constant 3 : index
    %c0_79 = arith.constant 0 : index
    %c0_80 = arith.constant 0 : index
    %107 = vector.load %arg2[%c3_78, %c0_79, %c0_80] : memref<9x1x256xf32, #tpu.memory_space<vmem>>, vector<1x1x256xf32>
    %108 = vector.shape_cast %107 : vector<1x1x256xf32> to vector<1x256xf32>
    %109 = vector.broadcast %108 : vector<1x256xf32> to vector<4x256xf32>
    %110 = arith.mulf %106, %109 : vector<4x256xf32>
    %c3_81 = arith.constant 3 : index
    %c0_82 = arith.constant 0 : index
    %c0_83 = arith.constant 0 : index
    %111 = vector.load %arg3[%c3_81, %c0_82, %c0_83] : memref<9x4x4xf32, #tpu.memory_space<vmem>>, vector<1x4x4xf32>
    %112 = vector.shape_cast %111 : vector<1x4x4xf32> to vector<4x4xf32>
    %cst_84 = arith.constant dense<0.000000e+00> : vector<4x256xf32>
    %113 = tpu.matmul %112, %110, %cst_84 {dimension_numbers = #tpu.dot_dimension_numbers<[1], [0], [0], [1], [0, 0, 1, 1], [], []>} : vector<4x4xf32>, vector<4x256xf32>, vector<4x256xf32> -> vector<4x256xf32>
    %114 = arith.addf %105, %113 : vector<4x256xf32>
    %c4_85 = arith.constant 4 : index
    %c0_86 = arith.constant 0 : index
    %c0_87 = arith.constant 0 : index
    %115 = vector.load %arg3[%c4_85, %c0_86, %c0_87] : memref<9x4x4xf32, #tpu.memory_space<vmem>>, vector<1x4x4xf32>
    %116 = vector.shape_cast %115 : vector<1x4x4xf32> to vector<4x4xf32>
    %cst_88 = arith.constant dense<0.000000e+00> : vector<4x256xf32>
    %117 = tpu.matmul %116, %79, %cst_88 {dimension_numbers = #tpu.dot_dimension_numbers<[1], [0], [0], [1], [0, 0, 1, 1], [], []>} : vector<4x4xf32>, vector<4x256xf32>, vector<4x256xf32> -> vector<4x256xf32>
    %118 = arith.addf %114, %117 : vector<4x256xf32>
    %c255_i32_89 = arith.constant 255 : i32
    %119 = tpu.dynamic_rotate %79 by %c255_i32_89 dim 1 : vector<4x256xf32>, i32 -> vector<4x256xf32>
    %c5_90 = arith.constant 5 : index
    %c0_91 = arith.constant 0 : index
    %c0_92 = arith.constant 0 : index
    %120 = vector.load %arg2[%c5_90, %c0_91, %c0_92] : memref<9x1x256xf32, #tpu.memory_space<vmem>>, vector<1x1x256xf32>
    %121 = vector.shape_cast %120 : vector<1x1x256xf32> to vector<1x256xf32>
    %122 = vector.broadcast %121 : vector<1x256xf32> to vector<4x256xf32>
    %123 = arith.mulf %119, %122 : vector<4x256xf32>
    %c5_93 = arith.constant 5 : index
    %c0_94 = arith.constant 0 : index
    %c0_95 = arith.constant 0 : index
    %124 = vector.load %arg3[%c5_93, %c0_94, %c0_95] : memref<9x4x4xf32, #tpu.memory_space<vmem>>, vector<1x4x4xf32>
    %125 = vector.shape_cast %124 : vector<1x4x4xf32> to vector<4x4xf32>
    %cst_96 = arith.constant dense<0.000000e+00> : vector<4x256xf32>
    %126 = tpu.matmul %125, %123, %cst_96 {dimension_numbers = #tpu.dot_dimension_numbers<[1], [0], [0], [1], [0, 0, 1, 1], [], []>} : vector<4x4xf32>, vector<4x256xf32>, vector<4x256xf32> -> vector<4x256xf32>
    %127 = arith.addf %118, %126 : vector<4x256xf32>
    %c241_i32_97 = arith.constant 241 : i32
    %128 = tpu.dynamic_rotate %79 by %c241_i32_97 dim 1 : vector<4x256xf32>, i32 -> vector<4x256xf32>
    %c6_98 = arith.constant 6 : index
    %c0_99 = arith.constant 0 : index
    %c0_100 = arith.constant 0 : index
    %129 = vector.load %arg2[%c6_98, %c0_99, %c0_100] : memref<9x1x256xf32, #tpu.memory_space<vmem>>, vector<1x1x256xf32>
    %130 = vector.shape_cast %129 : vector<1x1x256xf32> to vector<1x256xf32>
    %131 = vector.broadcast %130 : vector<1x256xf32> to vector<4x256xf32>
    %132 = arith.mulf %128, %131 : vector<4x256xf32>
    %c6_101 = arith.constant 6 : index
    %c0_102 = arith.constant 0 : index
    %c0_103 = arith.constant 0 : index
    %133 = vector.load %arg3[%c6_101, %c0_102, %c0_103] : memref<9x4x4xf32, #tpu.memory_space<vmem>>, vector<1x4x4xf32>
    %134 = vector.shape_cast %133 : vector<1x4x4xf32> to vector<4x4xf32>
    %cst_104 = arith.constant dense<0.000000e+00> : vector<4x256xf32>
    %135 = tpu.matmul %134, %132, %cst_104 {dimension_numbers = #tpu.dot_dimension_numbers<[1], [0], [0], [1], [0, 0, 1, 1], [], []>} : vector<4x4xf32>, vector<4x256xf32>, vector<4x256xf32> -> vector<4x256xf32>
    %136 = arith.addf %127, %135 : vector<4x256xf32>
    %c240_i32_105 = arith.constant 240 : i32
    %137 = tpu.dynamic_rotate %79 by %c240_i32_105 dim 1 : vector<4x256xf32>, i32 -> vector<4x256xf32>
    %c7_106 = arith.constant 7 : index
    %c0_107 = arith.constant 0 : index
    %c0_108 = arith.constant 0 : index
    %138 = vector.load %arg2[%c7_106, %c0_107, %c0_108] : memref<9x1x256xf32, #tpu.memory_space<vmem>>, vector<1x1x256xf32>
    %139 = vector.shape_cast %138 : vector<1x1x256xf32> to vector<1x256xf32>
    %140 = vector.broadcast %139 : vector<1x256xf32> to vector<4x256xf32>
    %141 = arith.mulf %137, %140 : vector<4x256xf32>
    %c7_109 = arith.constant 7 : index
    %c0_110 = arith.constant 0 : index
    %c0_111 = arith.constant 0 : index
    %142 = vector.load %arg3[%c7_109, %c0_110, %c0_111] : memref<9x4x4xf32, #tpu.memory_space<vmem>>, vector<1x4x4xf32>
    %143 = vector.shape_cast %142 : vector<1x4x4xf32> to vector<4x4xf32>
    %cst_112 = arith.constant dense<0.000000e+00> : vector<4x256xf32>
    %144 = tpu.matmul %143, %141, %cst_112 {dimension_numbers = #tpu.dot_dimension_numbers<[1], [0], [0], [1], [0, 0, 1, 1], [], []>} : vector<4x4xf32>, vector<4x256xf32>, vector<4x256xf32> -> vector<4x256xf32>
    %145 = arith.addf %136, %144 : vector<4x256xf32>
    %c239_i32_113 = arith.constant 239 : i32
    %146 = tpu.dynamic_rotate %79 by %c239_i32_113 dim 1 : vector<4x256xf32>, i32 -> vector<4x256xf32>
    %c8_114 = arith.constant 8 : index
    %c0_115 = arith.constant 0 : index
    %c0_116 = arith.constant 0 : index
    %147 = vector.load %arg2[%c8_114, %c0_115, %c0_116] : memref<9x1x256xf32, #tpu.memory_space<vmem>>, vector<1x1x256xf32>
    %148 = vector.shape_cast %147 : vector<1x1x256xf32> to vector<1x256xf32>
    %149 = vector.broadcast %148 : vector<1x256xf32> to vector<4x256xf32>
    %150 = arith.mulf %146, %149 : vector<4x256xf32>
    %c8_117 = arith.constant 8 : index
    %c0_118 = arith.constant 0 : index
    %c0_119 = arith.constant 0 : index
    %151 = vector.load %arg3[%c8_117, %c0_118, %c0_119] : memref<9x4x4xf32, #tpu.memory_space<vmem>>, vector<1x4x4xf32>
    %152 = vector.shape_cast %151 : vector<1x4x4xf32> to vector<4x4xf32>
    %cst_120 = arith.constant dense<0.000000e+00> : vector<4x256xf32>
    %153 = tpu.matmul %152, %150, %cst_120 {dimension_numbers = #tpu.dot_dimension_numbers<[1], [0], [0], [1], [0, 0, 1, 1], [], []>} : vector<4x4xf32>, vector<4x256xf32>, vector<4x256xf32> -> vector<4x256xf32>
    %154 = arith.addf %145, %153 : vector<4x256xf32>
    %155 = vector.shape_cast %77 : vector<4x256xf32> to vector<1x4x256xf32>
    %156 = vector.shape_cast %154 : vector<4x256xf32> to vector<1x4x256xf32>
    %157 = tpu.concatenate %155, %156 in 0 : vector<1x4x256xf32>, vector<1x4x256xf32> -> vector<2x4x256xf32>
    %cst_121 = arith.constant dense<0.000000e+00> : vector<2x4xf32>
    %158 = vector.multi_reduction <add>, %157, %cst_121 [2] : vector<2x4x256xf32> to vector<2x4xf32>
    %159 = vector.shape_cast %158 : vector<2x4xf32> to vector<2x4x1xf32>
    %cst_122 = arith.constant dense<0.000000e+00> : vector<4x1xf32>
    %160 = vector.multi_reduction <add>, %159, %cst_122 [0] : vector<2x4x1xf32> to vector<4x1xf32>
    %161 = vector.shape_cast %160 : vector<4x1xf32> to vector<1x4x1xf32>
    %162 = arith.mulf %157, %157 : vector<2x4x256xf32>
    %cst_123 = arith.constant dense<0.000000e+00> : vector<2x4xf32>
    %163 = vector.multi_reduction <add>, %162, %cst_123 [2] : vector<2x4x256xf32> to vector<2x4xf32>
    %164 = vector.shape_cast %163 : vector<2x4xf32> to vector<2x4x1xf32>
    %cst_124 = arith.constant dense<0.000000e+00> : vector<4x1xf32>
    %165 = vector.multi_reduction <add>, %164, %cst_124 [0] : vector<2x4x1xf32> to vector<4x1xf32>
    %166 = vector.shape_cast %165 : vector<4x1xf32> to vector<1x4x1xf32>
    %cst_125 = arith.constant 0.001953125 : f32
    %167 = vector.broadcast %cst_125 : f32 to vector<1x4x1xf32>
    %168 = arith.mulf %161, %167 : vector<1x4x1xf32>
    %cst_126 = arith.constant 0.001953125 : f32
    %169 = vector.broadcast %cst_126 : f32 to vector<1x4x1xf32>
    %170 = arith.mulf %166, %169 : vector<1x4x1xf32>
    %171 = arith.mulf %168, %168 : vector<1x4x1xf32>
    %172 = arith.subf %170, %171 : vector<1x4x1xf32>
    %173 = vector.broadcast %168 : vector<1x4x1xf32> to vector<2x4x256xf32>
    %174 = arith.subf %157, %173 : vector<2x4x256xf32>
    %cst_127 = arith.constant 9.99999974E-6 : f32
    %175 = vector.broadcast %cst_127 : f32 to vector<1x4x1xf32>
    %176 = arith.addf %172, %175 : vector<1x4x1xf32>
    %177 = math.rsqrt %176 : vector<1x4x1xf32>
    %178 = vector.broadcast %177 : vector<1x4x1xf32> to vector<2x4x256xf32>
    %179 = arith.mulf %174, %178 : vector<2x4x256xf32>
    %c0_128 = arith.constant 0 : index
    %c0_129 = arith.constant 0 : index
    %c0_130 = arith.constant 0 : index
    %180 = vector.load %arg5[%c0_128, %c0_129, %c0_130] : memref<1x4x1xf32, #tpu.memory_space<vmem>>, vector<1x4x1xf32>
    %181 = vector.broadcast %180 : vector<1x4x1xf32> to vector<2x4x256xf32>
    %182 = arith.mulf %179, %181 : vector<2x4x256xf32>
    %c0_131 = arith.constant 0 : index
    %c0_132 = arith.constant 0 : index
    %c0_133 = arith.constant 0 : index
    %183 = vector.load %arg6[%c0_131, %c0_132, %c0_133] : memref<1x4x1xf32, #tpu.memory_space<vmem>>, vector<1x4x1xf32>
    %184 = vector.broadcast %183 : vector<1x4x1xf32> to vector<2x4x256xf32>
    %185 = arith.addf %182, %184 : vector<2x4x256xf32>
    %cst_134 = arith.constant 0.000000e+00 : f32
    %186 = vector.broadcast %cst_134 : f32 to vector<2x4x256xf32>
    %187 = arith.maximumf %185, %186 : vector<2x4x256xf32>
    %188 = vector.extract_strided_slice %187 {offsets = [0, 0, 0], sizes = [1, 4, 256], strides = [1, 1, 1]} : vector<2x4x256xf32> to vector<1x4x256xf32>
    %189 = vector.shape_cast %188 : vector<1x4x256xf32> to vector<4x256xf32>
    %c17_i32_135 = arith.constant 17 : i32
    %190 = tpu.dynamic_rotate %189 by %c17_i32_135 dim 1 : vector<4x256xf32>, i32 -> vector<4x256xf32>
    %c0_136 = arith.constant 0 : index
    %c0_137 = arith.constant 0 : index
    %c0_138 = arith.constant 0 : index
    %191 = vector.load %arg2[%c0_136, %c0_137, %c0_138] : memref<9x1x256xf32, #tpu.memory_space<vmem>>, vector<1x1x256xf32>
    %192 = vector.shape_cast %191 : vector<1x1x256xf32> to vector<1x256xf32>
    %193 = vector.broadcast %192 : vector<1x256xf32> to vector<4x256xf32>
    %194 = arith.mulf %190, %193 : vector<4x256xf32>
    %c0_139 = arith.constant 0 : index
    %c0_140 = arith.constant 0 : index
    %c0_141 = arith.constant 0 : index
    %195 = vector.load %arg4[%c0_139, %c0_140, %c0_141] : memref<9x4x4xf32, #tpu.memory_space<vmem>>, vector<1x4x4xf32>
    %196 = vector.shape_cast %195 : vector<1x4x4xf32> to vector<4x4xf32>
    %cst_142 = arith.constant dense<0.000000e+00> : vector<4x256xf32>
    %197 = tpu.matmul %196, %194, %cst_142 {dimension_numbers = #tpu.dot_dimension_numbers<[1], [0], [0], [1], [0, 0, 1, 1], [], []>} : vector<4x4xf32>, vector<4x256xf32>, vector<4x256xf32> -> vector<4x256xf32>
    %c16_i32_143 = arith.constant 16 : i32
    %198 = tpu.dynamic_rotate %189 by %c16_i32_143 dim 1 : vector<4x256xf32>, i32 -> vector<4x256xf32>
    %c1_144 = arith.constant 1 : index
    %c0_145 = arith.constant 0 : index
    %c0_146 = arith.constant 0 : index
    %199 = vector.load %arg2[%c1_144, %c0_145, %c0_146] : memref<9x1x256xf32, #tpu.memory_space<vmem>>, vector<1x1x256xf32>
    %200 = vector.shape_cast %199 : vector<1x1x256xf32> to vector<1x256xf32>
    %201 = vector.broadcast %200 : vector<1x256xf32> to vector<4x256xf32>
    %202 = arith.mulf %198, %201 : vector<4x256xf32>
    %c1_147 = arith.constant 1 : index
    %c0_148 = arith.constant 0 : index
    %c0_149 = arith.constant 0 : index
    %203 = vector.load %arg4[%c1_147, %c0_148, %c0_149] : memref<9x4x4xf32, #tpu.memory_space<vmem>>, vector<1x4x4xf32>
    %204 = vector.shape_cast %203 : vector<1x4x4xf32> to vector<4x4xf32>
    %cst_150 = arith.constant dense<0.000000e+00> : vector<4x256xf32>
    %205 = tpu.matmul %204, %202, %cst_150 {dimension_numbers = #tpu.dot_dimension_numbers<[1], [0], [0], [1], [0, 0, 1, 1], [], []>} : vector<4x4xf32>, vector<4x256xf32>, vector<4x256xf32> -> vector<4x256xf32>
    %206 = arith.addf %197, %205 : vector<4x256xf32>
    %c15_i32_151 = arith.constant 15 : i32
    %207 = tpu.dynamic_rotate %189 by %c15_i32_151 dim 1 : vector<4x256xf32>, i32 -> vector<4x256xf32>
    %c2_152 = arith.constant 2 : index
    %c0_153 = arith.constant 0 : index
    %c0_154 = arith.constant 0 : index
    %208 = vector.load %arg2[%c2_152, %c0_153, %c0_154] : memref<9x1x256xf32, #tpu.memory_space<vmem>>, vector<1x1x256xf32>
    %209 = vector.shape_cast %208 : vector<1x1x256xf32> to vector<1x256xf32>
    %210 = vector.broadcast %209 : vector<1x256xf32> to vector<4x256xf32>
    %211 = arith.mulf %207, %210 : vector<4x256xf32>
    %c2_155 = arith.constant 2 : index
    %c0_156 = arith.constant 0 : index
    %c0_157 = arith.constant 0 : index
    %212 = vector.load %arg4[%c2_155, %c0_156, %c0_157] : memref<9x4x4xf32, #tpu.memory_space<vmem>>, vector<1x4x4xf32>
    %213 = vector.shape_cast %212 : vector<1x4x4xf32> to vector<4x4xf32>
    %cst_158 = arith.constant dense<0.000000e+00> : vector<4x256xf32>
    %214 = tpu.matmul %213, %211, %cst_158 {dimension_numbers = #tpu.dot_dimension_numbers<[1], [0], [0], [1], [0, 0, 1, 1], [], []>} : vector<4x4xf32>, vector<4x256xf32>, vector<4x256xf32> -> vector<4x256xf32>
    %215 = arith.addf %206, %214 : vector<4x256xf32>
    %c1_i32_159 = arith.constant 1 : i32
    %216 = tpu.dynamic_rotate %189 by %c1_i32_159 dim 1 : vector<4x256xf32>, i32 -> vector<4x256xf32>
    %c3_160 = arith.constant 3 : index
    %c0_161 = arith.constant 0 : index
    %c0_162 = arith.constant 0 : index
    %217 = vector.load %arg2[%c3_160, %c0_161, %c0_162] : memref<9x1x256xf32, #tpu.memory_space<vmem>>, vector<1x1x256xf32>
    %218 = vector.shape_cast %217 : vector<1x1x256xf32> to vector<1x256xf32>
    %219 = vector.broadcast %218 : vector<1x256xf32> to vector<4x256xf32>
    %220 = arith.mulf %216, %219 : vector<4x256xf32>
    %c3_163 = arith.constant 3 : index
    %c0_164 = arith.constant 0 : index
    %c0_165 = arith.constant 0 : index
    %221 = vector.load %arg4[%c3_163, %c0_164, %c0_165] : memref<9x4x4xf32, #tpu.memory_space<vmem>>, vector<1x4x4xf32>
    %222 = vector.shape_cast %221 : vector<1x4x4xf32> to vector<4x4xf32>
    %cst_166 = arith.constant dense<0.000000e+00> : vector<4x256xf32>
    %223 = tpu.matmul %222, %220, %cst_166 {dimension_numbers = #tpu.dot_dimension_numbers<[1], [0], [0], [1], [0, 0, 1, 1], [], []>} : vector<4x4xf32>, vector<4x256xf32>, vector<4x256xf32> -> vector<4x256xf32>
    %224 = arith.addf %215, %223 : vector<4x256xf32>
    %c4_167 = arith.constant 4 : index
    %c0_168 = arith.constant 0 : index
    %c0_169 = arith.constant 0 : index
    %225 = vector.load %arg4[%c4_167, %c0_168, %c0_169] : memref<9x4x4xf32, #tpu.memory_space<vmem>>, vector<1x4x4xf32>
    %226 = vector.shape_cast %225 : vector<1x4x4xf32> to vector<4x4xf32>
    %cst_170 = arith.constant dense<0.000000e+00> : vector<4x256xf32>
    %227 = tpu.matmul %226, %189, %cst_170 {dimension_numbers = #tpu.dot_dimension_numbers<[1], [0], [0], [1], [0, 0, 1, 1], [], []>} : vector<4x4xf32>, vector<4x256xf32>, vector<4x256xf32> -> vector<4x256xf32>
    %228 = arith.addf %224, %227 : vector<4x256xf32>
    %c255_i32_171 = arith.constant 255 : i32
    %229 = tpu.dynamic_rotate %189 by %c255_i32_171 dim 1 : vector<4x256xf32>, i32 -> vector<4x256xf32>
    %c5_172 = arith.constant 5 : index
    %c0_173 = arith.constant 0 : index
    %c0_174 = arith.constant 0 : index
    %230 = vector.load %arg2[%c5_172, %c0_173, %c0_174] : memref<9x1x256xf32, #tpu.memory_space<vmem>>, vector<1x1x256xf32>
    %231 = vector.shape_cast %230 : vector<1x1x256xf32> to vector<1x256xf32>
    %232 = vector.broadcast %231 : vector<1x256xf32> to vector<4x256xf32>
    %233 = arith.mulf %229, %232 : vector<4x256xf32>
    %c5_175 = arith.constant 5 : index
    %c0_176 = arith.constant 0 : index
    %c0_177 = arith.constant 0 : index
    %234 = vector.load %arg4[%c5_175, %c0_176, %c0_177] : memref<9x4x4xf32, #tpu.memory_space<vmem>>, vector<1x4x4xf32>
    %235 = vector.shape_cast %234 : vector<1x4x4xf32> to vector<4x4xf32>
    %cst_178 = arith.constant dense<0.000000e+00> : vector<4x256xf32>
    %236 = tpu.matmul %235, %233, %cst_178 {dimension_numbers = #tpu.dot_dimension_numbers<[1], [0], [0], [1], [0, 0, 1, 1], [], []>} : vector<4x4xf32>, vector<4x256xf32>, vector<4x256xf32> -> vector<4x256xf32>
    %237 = arith.addf %228, %236 : vector<4x256xf32>
    %c241_i32_179 = arith.constant 241 : i32
    %238 = tpu.dynamic_rotate %189 by %c241_i32_179 dim 1 : vector<4x256xf32>, i32 -> vector<4x256xf32>
    %c6_180 = arith.constant 6 : index
    %c0_181 = arith.constant 0 : index
    %c0_182 = arith.constant 0 : index
    %239 = vector.load %arg2[%c6_180, %c0_181, %c0_182] : memref<9x1x256xf32, #tpu.memory_space<vmem>>, vector<1x1x256xf32>
    %240 = vector.shape_cast %239 : vector<1x1x256xf32> to vector<1x256xf32>
    %241 = vector.broadcast %240 : vector<1x256xf32> to vector<4x256xf32>
    %242 = arith.mulf %238, %241 : vector<4x256xf32>
    %c6_183 = arith.constant 6 : index
    %c0_184 = arith.constant 0 : index
    %c0_185 = arith.constant 0 : index
    %243 = vector.load %arg4[%c6_183, %c0_184, %c0_185] : memref<9x4x4xf32, #tpu.memory_space<vmem>>, vector<1x4x4xf32>
    %244 = vector.shape_cast %243 : vector<1x4x4xf32> to vector<4x4xf32>
    %cst_186 = arith.constant dense<0.000000e+00> : vector<4x256xf32>
    %245 = tpu.matmul %244, %242, %cst_186 {dimension_numbers = #tpu.dot_dimension_numbers<[1], [0], [0], [1], [0, 0, 1, 1], [], []>} : vector<4x4xf32>, vector<4x256xf32>, vector<4x256xf32> -> vector<4x256xf32>
    %246 = arith.addf %237, %245 : vector<4x256xf32>
    %c240_i32_187 = arith.constant 240 : i32
    %247 = tpu.dynamic_rotate %189 by %c240_i32_187 dim 1 : vector<4x256xf32>, i32 -> vector<4x256xf32>
    %c7_188 = arith.constant 7 : index
    %c0_189 = arith.constant 0 : index
    %c0_190 = arith.constant 0 : index
    %248 = vector.load %arg2[%c7_188, %c0_189, %c0_190] : memref<9x1x256xf32, #tpu.memory_space<vmem>>, vector<1x1x256xf32>
    %249 = vector.shape_cast %248 : vector<1x1x256xf32> to vector<1x256xf32>
    %250 = vector.broadcast %249 : vector<1x256xf32> to vector<4x256xf32>
    %251 = arith.mulf %247, %250 : vector<4x256xf32>
    %c7_191 = arith.constant 7 : index
    %c0_192 = arith.constant 0 : index
    %c0_193 = arith.constant 0 : index
    %252 = vector.load %arg4[%c7_191, %c0_192, %c0_193] : memref<9x4x4xf32, #tpu.memory_space<vmem>>, vector<1x4x4xf32>
    %253 = vector.shape_cast %252 : vector<1x4x4xf32> to vector<4x4xf32>
    %cst_194 = arith.constant dense<0.000000e+00> : vector<4x256xf32>
    %254 = tpu.matmul %253, %251, %cst_194 {dimension_numbers = #tpu.dot_dimension_numbers<[1], [0], [0], [1], [0, 0, 1, 1], [], []>} : vector<4x4xf32>, vector<4x256xf32>, vector<4x256xf32> -> vector<4x256xf32>
    %255 = arith.addf %246, %254 : vector<4x256xf32>
    %c239_i32_195 = arith.constant 239 : i32
    %256 = tpu.dynamic_rotate %189 by %c239_i32_195 dim 1 : vector<4x256xf32>, i32 -> vector<4x256xf32>
    %c8_196 = arith.constant 8 : index
    %c0_197 = arith.constant 0 : index
    %c0_198 = arith.constant 0 : index
    %257 = vector.load %arg2[%c8_196, %c0_197, %c0_198] : memref<9x1x256xf32, #tpu.memory_space<vmem>>, vector<1x1x256xf32>
    %258 = vector.shape_cast %257 : vector<1x1x256xf32> to vector<1x256xf32>
    %259 = vector.broadcast %258 : vector<1x256xf32> to vector<4x256xf32>
    %260 = arith.mulf %256, %259 : vector<4x256xf32>
    %c8_199 = arith.constant 8 : index
    %c0_200 = arith.constant 0 : index
    %c0_201 = arith.constant 0 : index
    %261 = vector.load %arg4[%c8_199, %c0_200, %c0_201] : memref<9x4x4xf32, #tpu.memory_space<vmem>>, vector<1x4x4xf32>
    %262 = vector.shape_cast %261 : vector<1x4x4xf32> to vector<4x4xf32>
    %cst_202 = arith.constant dense<0.000000e+00> : vector<4x256xf32>
    %263 = tpu.matmul %262, %260, %cst_202 {dimension_numbers = #tpu.dot_dimension_numbers<[1], [0], [0], [1], [0, 0, 1, 1], [], []>} : vector<4x4xf32>, vector<4x256xf32>, vector<4x256xf32> -> vector<4x256xf32>
    %264 = arith.addf %255, %263 : vector<4x256xf32>
    %265 = vector.extract_strided_slice %187 {offsets = [1, 0, 0], sizes = [1, 4, 256], strides = [1, 1, 1]} : vector<2x4x256xf32> to vector<1x4x256xf32>
    %266 = vector.shape_cast %265 : vector<1x4x256xf32> to vector<4x256xf32>
    %c17_i32_203 = arith.constant 17 : i32
    %267 = tpu.dynamic_rotate %266 by %c17_i32_203 dim 1 : vector<4x256xf32>, i32 -> vector<4x256xf32>
    %c0_204 = arith.constant 0 : index
    %c0_205 = arith.constant 0 : index
    %c0_206 = arith.constant 0 : index
    %268 = vector.load %arg2[%c0_204, %c0_205, %c0_206] : memref<9x1x256xf32, #tpu.memory_space<vmem>>, vector<1x1x256xf32>
    %269 = vector.shape_cast %268 : vector<1x1x256xf32> to vector<1x256xf32>
    %270 = vector.broadcast %269 : vector<1x256xf32> to vector<4x256xf32>
    %271 = arith.mulf %267, %270 : vector<4x256xf32>
    %c0_207 = arith.constant 0 : index
    %c0_208 = arith.constant 0 : index
    %c0_209 = arith.constant 0 : index
    %272 = vector.load %arg4[%c0_207, %c0_208, %c0_209] : memref<9x4x4xf32, #tpu.memory_space<vmem>>, vector<1x4x4xf32>
    %273 = vector.shape_cast %272 : vector<1x4x4xf32> to vector<4x4xf32>
    %cst_210 = arith.constant dense<0.000000e+00> : vector<4x256xf32>
    %274 = tpu.matmul %273, %271, %cst_210 {dimension_numbers = #tpu.dot_dimension_numbers<[1], [0], [0], [1], [0, 0, 1, 1], [], []>} : vector<4x4xf32>, vector<4x256xf32>, vector<4x256xf32> -> vector<4x256xf32>
    %c16_i32_211 = arith.constant 16 : i32
    %275 = tpu.dynamic_rotate %266 by %c16_i32_211 dim 1 : vector<4x256xf32>, i32 -> vector<4x256xf32>
    %c1_212 = arith.constant 1 : index
    %c0_213 = arith.constant 0 : index
    %c0_214 = arith.constant 0 : index
    %276 = vector.load %arg2[%c1_212, %c0_213, %c0_214] : memref<9x1x256xf32, #tpu.memory_space<vmem>>, vector<1x1x256xf32>
    %277 = vector.shape_cast %276 : vector<1x1x256xf32> to vector<1x256xf32>
    %278 = vector.broadcast %277 : vector<1x256xf32> to vector<4x256xf32>
    %279 = arith.mulf %275, %278 : vector<4x256xf32>
    %c1_215 = arith.constant 1 : index
    %c0_216 = arith.constant 0 : index
    %c0_217 = arith.constant 0 : index
    %280 = vector.load %arg4[%c1_215, %c0_216, %c0_217] : memref<9x4x4xf32, #tpu.memory_space<vmem>>, vector<1x4x4xf32>
    %281 = vector.shape_cast %280 : vector<1x4x4xf32> to vector<4x4xf32>
    %cst_218 = arith.constant dense<0.000000e+00> : vector<4x256xf32>
    %282 = tpu.matmul %281, %279, %cst_218 {dimension_numbers = #tpu.dot_dimension_numbers<[1], [0], [0], [1], [0, 0, 1, 1], [], []>} : vector<4x4xf32>, vector<4x256xf32>, vector<4x256xf32> -> vector<4x256xf32>
    %283 = arith.addf %274, %282 : vector<4x256xf32>
    %c15_i32_219 = arith.constant 15 : i32
    %284 = tpu.dynamic_rotate %266 by %c15_i32_219 dim 1 : vector<4x256xf32>, i32 -> vector<4x256xf32>
    %c2_220 = arith.constant 2 : index
    %c0_221 = arith.constant 0 : index
    %c0_222 = arith.constant 0 : index
    %285 = vector.load %arg2[%c2_220, %c0_221, %c0_222] : memref<9x1x256xf32, #tpu.memory_space<vmem>>, vector<1x1x256xf32>
    %286 = vector.shape_cast %285 : vector<1x1x256xf32> to vector<1x256xf32>
    %287 = vector.broadcast %286 : vector<1x256xf32> to vector<4x256xf32>
    %288 = arith.mulf %284, %287 : vector<4x256xf32>
    %c2_223 = arith.constant 2 : index
    %c0_224 = arith.constant 0 : index
    %c0_225 = arith.constant 0 : index
    %289 = vector.load %arg4[%c2_223, %c0_224, %c0_225] : memref<9x4x4xf32, #tpu.memory_space<vmem>>, vector<1x4x4xf32>
    %290 = vector.shape_cast %289 : vector<1x4x4xf32> to vector<4x4xf32>
    %cst_226 = arith.constant dense<0.000000e+00> : vector<4x256xf32>
    %291 = tpu.matmul %290, %288, %cst_226 {dimension_numbers = #tpu.dot_dimension_numbers<[1], [0], [0], [1], [0, 0, 1, 1], [], []>} : vector<4x4xf32>, vector<4x256xf32>, vector<4x256xf32> -> vector<4x256xf32>
    %292 = arith.addf %283, %291 : vector<4x256xf32>
    %c1_i32_227 = arith.constant 1 : i32
    %293 = tpu.dynamic_rotate %266 by %c1_i32_227 dim 1 : vector<4x256xf32>, i32 -> vector<4x256xf32>
    %c3_228 = arith.constant 3 : index
    %c0_229 = arith.constant 0 : index
    %c0_230 = arith.constant 0 : index
    %294 = vector.load %arg2[%c3_228, %c0_229, %c0_230] : memref<9x1x256xf32, #tpu.memory_space<vmem>>, vector<1x1x256xf32>
    %295 = vector.shape_cast %294 : vector<1x1x256xf32> to vector<1x256xf32>
    %296 = vector.broadcast %295 : vector<1x256xf32> to vector<4x256xf32>
    %297 = arith.mulf %293, %296 : vector<4x256xf32>
    %c3_231 = arith.constant 3 : index
    %c0_232 = arith.constant 0 : index
    %c0_233 = arith.constant 0 : index
    %298 = vector.load %arg4[%c3_231, %c0_232, %c0_233] : memref<9x4x4xf32, #tpu.memory_space<vmem>>, vector<1x4x4xf32>
    %299 = vector.shape_cast %298 : vector<1x4x4xf32> to vector<4x4xf32>
    %cst_234 = arith.constant dense<0.000000e+00> : vector<4x256xf32>
    %300 = tpu.matmul %299, %297, %cst_234 {dimension_numbers = #tpu.dot_dimension_numbers<[1], [0], [0], [1], [0, 0, 1, 1], [], []>} : vector<4x4xf32>, vector<4x256xf32>, vector<4x256xf32> -> vector<4x256xf32>
    %301 = arith.addf %292, %300 : vector<4x256xf32>
    %c4_235 = arith.constant 4 : index
    %c0_236 = arith.constant 0 : index
    %c0_237 = arith.constant 0 : index
    %302 = vector.load %arg4[%c4_235, %c0_236, %c0_237] : memref<9x4x4xf32, #tpu.memory_space<vmem>>, vector<1x4x4xf32>
    %303 = vector.shape_cast %302 : vector<1x4x4xf32> to vector<4x4xf32>
    %cst_238 = arith.constant dense<0.000000e+00> : vector<4x256xf32>
    %304 = tpu.matmul %303, %266, %cst_238 {dimension_numbers = #tpu.dot_dimension_numbers<[1], [0], [0], [1], [0, 0, 1, 1], [], []>} : vector<4x4xf32>, vector<4x256xf32>, vector<4x256xf32> -> vector<4x256xf32>
    %305 = arith.addf %301, %304 : vector<4x256xf32>
    %c255_i32_239 = arith.constant 255 : i32
    %306 = tpu.dynamic_rotate %266 by %c255_i32_239 dim 1 : vector<4x256xf32>, i32 -> vector<4x256xf32>
    %c5_240 = arith.constant 5 : index
    %c0_241 = arith.constant 0 : index
    %c0_242 = arith.constant 0 : index
    %307 = vector.load %arg2[%c5_240, %c0_241, %c0_242] : memref<9x1x256xf32, #tpu.memory_space<vmem>>, vector<1x1x256xf32>
    %308 = vector.shape_cast %307 : vector<1x1x256xf32> to vector<1x256xf32>
    %309 = vector.broadcast %308 : vector<1x256xf32> to vector<4x256xf32>
    %310 = arith.mulf %306, %309 : vector<4x256xf32>
    %c5_243 = arith.constant 5 : index
    %c0_244 = arith.constant 0 : index
    %c0_245 = arith.constant 0 : index
    %311 = vector.load %arg4[%c5_243, %c0_244, %c0_245] : memref<9x4x4xf32, #tpu.memory_space<vmem>>, vector<1x4x4xf32>
    %312 = vector.shape_cast %311 : vector<1x4x4xf32> to vector<4x4xf32>
    %cst_246 = arith.constant dense<0.000000e+00> : vector<4x256xf32>
    %313 = tpu.matmul %312, %310, %cst_246 {dimension_numbers = #tpu.dot_dimension_numbers<[1], [0], [0], [1], [0, 0, 1, 1], [], []>} : vector<4x4xf32>, vector<4x256xf32>, vector<4x256xf32> -> vector<4x256xf32>
    %314 = arith.addf %305, %313 : vector<4x256xf32>
    %c241_i32_247 = arith.constant 241 : i32
    %315 = tpu.dynamic_rotate %266 by %c241_i32_247 dim 1 : vector<4x256xf32>, i32 -> vector<4x256xf32>
    %c6_248 = arith.constant 6 : index
    %c0_249 = arith.constant 0 : index
    %c0_250 = arith.constant 0 : index
    %316 = vector.load %arg2[%c6_248, %c0_249, %c0_250] : memref<9x1x256xf32, #tpu.memory_space<vmem>>, vector<1x1x256xf32>
    %317 = vector.shape_cast %316 : vector<1x1x256xf32> to vector<1x256xf32>
    %318 = vector.broadcast %317 : vector<1x256xf32> to vector<4x256xf32>
    %319 = arith.mulf %315, %318 : vector<4x256xf32>
    %c6_251 = arith.constant 6 : index
    %c0_252 = arith.constant 0 : index
    %c0_253 = arith.constant 0 : index
    %320 = vector.load %arg4[%c6_251, %c0_252, %c0_253] : memref<9x4x4xf32, #tpu.memory_space<vmem>>, vector<1x4x4xf32>
    %321 = vector.shape_cast %320 : vector<1x4x4xf32> to vector<4x4xf32>
    %cst_254 = arith.constant dense<0.000000e+00> : vector<4x256xf32>
    %322 = tpu.matmul %321, %319, %cst_254 {dimension_numbers = #tpu.dot_dimension_numbers<[1], [0], [0], [1], [0, 0, 1, 1], [], []>} : vector<4x4xf32>, vector<4x256xf32>, vector<4x256xf32> -> vector<4x256xf32>
    %323 = arith.addf %314, %322 : vector<4x256xf32>
    %c240_i32_255 = arith.constant 240 : i32
    %324 = tpu.dynamic_rotate %266 by %c240_i32_255 dim 1 : vector<4x256xf32>, i32 -> vector<4x256xf32>
    %c7_256 = arith.constant 7 : index
    %c0_257 = arith.constant 0 : index
    %c0_258 = arith.constant 0 : index
    %325 = vector.load %arg2[%c7_256, %c0_257, %c0_258] : memref<9x1x256xf32, #tpu.memory_space<vmem>>, vector<1x1x256xf32>
    %326 = vector.shape_cast %325 : vector<1x1x256xf32> to vector<1x256xf32>
    %327 = vector.broadcast %326 : vector<1x256xf32> to vector<4x256xf32>
    %328 = arith.mulf %324, %327 : vector<4x256xf32>
    %c7_259 = arith.constant 7 : index
    %c0_260 = arith.constant 0 : index
    %c0_261 = arith.constant 0 : index
    %329 = vector.load %arg4[%c7_259, %c0_260, %c0_261] : memref<9x4x4xf32, #tpu.memory_space<vmem>>, vector<1x4x4xf32>
    %330 = vector.shape_cast %329 : vector<1x4x4xf32> to vector<4x4xf32>
    %cst_262 = arith.constant dense<0.000000e+00> : vector<4x256xf32>
    %331 = tpu.matmul %330, %328, %cst_262 {dimension_numbers = #tpu.dot_dimension_numbers<[1], [0], [0], [1], [0, 0, 1, 1], [], []>} : vector<4x4xf32>, vector<4x256xf32>, vector<4x256xf32> -> vector<4x256xf32>
    %332 = arith.addf %323, %331 : vector<4x256xf32>
    %c239_i32_263 = arith.constant 239 : i32
    %333 = tpu.dynamic_rotate %266 by %c239_i32_263 dim 1 : vector<4x256xf32>, i32 -> vector<4x256xf32>
    %c8_264 = arith.constant 8 : index
    %c0_265 = arith.constant 0 : index
    %c0_266 = arith.constant 0 : index
    %334 = vector.load %arg2[%c8_264, %c0_265, %c0_266] : memref<9x1x256xf32, #tpu.memory_space<vmem>>, vector<1x1x256xf32>
    %335 = vector.shape_cast %334 : vector<1x1x256xf32> to vector<1x256xf32>
    %336 = vector.broadcast %335 : vector<1x256xf32> to vector<4x256xf32>
    %337 = arith.mulf %333, %336 : vector<4x256xf32>
    %c8_267 = arith.constant 8 : index
    %c0_268 = arith.constant 0 : index
    %c0_269 = arith.constant 0 : index
    %338 = vector.load %arg4[%c8_267, %c0_268, %c0_269] : memref<9x4x4xf32, #tpu.memory_space<vmem>>, vector<1x4x4xf32>
    %339 = vector.shape_cast %338 : vector<1x4x4xf32> to vector<4x4xf32>
    %cst_270 = arith.constant dense<0.000000e+00> : vector<4x256xf32>
    %340 = tpu.matmul %339, %337, %cst_270 {dimension_numbers = #tpu.dot_dimension_numbers<[1], [0], [0], [1], [0, 0, 1, 1], [], []>} : vector<4x4xf32>, vector<4x256xf32>, vector<4x256xf32> -> vector<4x256xf32>
    %341 = arith.addf %332, %340 : vector<4x256xf32>
    %342 = vector.shape_cast %264 : vector<4x256xf32> to vector<1x4x256xf32>
    %343 = vector.shape_cast %341 : vector<4x256xf32> to vector<1x4x256xf32>
    %344 = tpu.concatenate %342, %343 in 0 : vector<1x4x256xf32>, vector<1x4x256xf32> -> vector<2x4x256xf32>
    %cst_271 = arith.constant dense<0.000000e+00> : vector<2x4xf32>
    %345 = vector.multi_reduction <add>, %344, %cst_271 [2] : vector<2x4x256xf32> to vector<2x4xf32>
    %346 = vector.shape_cast %345 : vector<2x4xf32> to vector<2x4x1xf32>
    %cst_272 = arith.constant dense<0.000000e+00> : vector<4x1xf32>
    %347 = vector.multi_reduction <add>, %346, %cst_272 [0] : vector<2x4x1xf32> to vector<4x1xf32>
    %348 = vector.shape_cast %347 : vector<4x1xf32> to vector<1x4x1xf32>
    %349 = arith.mulf %344, %344 : vector<2x4x256xf32>
    %cst_273 = arith.constant dense<0.000000e+00> : vector<2x4xf32>
    %350 = vector.multi_reduction <add>, %349, %cst_273 [2] : vector<2x4x256xf32> to vector<2x4xf32>
    %351 = vector.shape_cast %350 : vector<2x4xf32> to vector<2x4x1xf32>
    %cst_274 = arith.constant dense<0.000000e+00> : vector<4x1xf32>
    %352 = vector.multi_reduction <add>, %351, %cst_274 [0] : vector<2x4x1xf32> to vector<4x1xf32>
    %353 = vector.shape_cast %352 : vector<4x1xf32> to vector<1x4x1xf32>
    %cst_275 = arith.constant 0.001953125 : f32
    %354 = vector.broadcast %cst_275 : f32 to vector<1x4x1xf32>
    %355 = arith.mulf %348, %354 : vector<1x4x1xf32>
    %cst_276 = arith.constant 0.001953125 : f32
    %356 = vector.broadcast %cst_276 : f32 to vector<1x4x1xf32>
    %357 = arith.mulf %353, %356 : vector<1x4x1xf32>
    %358 = arith.mulf %355, %355 : vector<1x4x1xf32>
    %359 = arith.subf %357, %358 : vector<1x4x1xf32>
    %360 = vector.broadcast %355 : vector<1x4x1xf32> to vector<2x4x256xf32>
    %361 = arith.subf %344, %360 : vector<2x4x256xf32>
    %cst_277 = arith.constant 9.99999974E-6 : f32
    %362 = vector.broadcast %cst_277 : f32 to vector<1x4x1xf32>
    %363 = arith.addf %359, %362 : vector<1x4x1xf32>
    %364 = math.rsqrt %363 : vector<1x4x1xf32>
    %365 = vector.broadcast %364 : vector<1x4x1xf32> to vector<2x4x256xf32>
    %366 = arith.mulf %361, %365 : vector<2x4x256xf32>
    %c0_278 = arith.constant 0 : index
    %c0_279 = arith.constant 0 : index
    %c0_280 = arith.constant 0 : index
    %367 = vector.load %arg7[%c0_278, %c0_279, %c0_280] : memref<1x4x1xf32, #tpu.memory_space<vmem>>, vector<1x4x1xf32>
    %368 = vector.broadcast %367 : vector<1x4x1xf32> to vector<2x4x256xf32>
    %369 = arith.mulf %366, %368 : vector<2x4x256xf32>
    %c0_281 = arith.constant 0 : index
    %c0_282 = arith.constant 0 : index
    %c0_283 = arith.constant 0 : index
    %370 = vector.load %arg8[%c0_281, %c0_282, %c0_283] : memref<1x4x1xf32, #tpu.memory_space<vmem>>, vector<1x4x1xf32>
    %371 = vector.broadcast %370 : vector<1x4x1xf32> to vector<2x4x256xf32>
    %372 = arith.addf %369, %371 : vector<2x4x256xf32>
    %373 = arith.addf %372, %0 : vector<2x4x256xf32>
    %cst_284 = arith.constant 0.000000e+00 : f32
    %374 = vector.broadcast %cst_284 : f32 to vector<2x4x256xf32>
    %375 = arith.maximumf %373, %374 : vector<2x4x256xf32>
    %c0_285 = arith.constant 0 : index
    %c0_286 = arith.constant 0 : index
    %c0_287 = arith.constant 0 : index
    %376 = vector.load %arg9[%c0_285, %c0_286, %c0_287] : memref<2x4x256xf32, #tpu.memory_space<vmem>>, vector<2x4x256xf32>
    tpu.vector_store %arg9[%c0_285, %c0_286, %c0_287], %375 {strides = array<i32>} : memref<2x4x256xf32, #tpu.memory_space<vmem>>, vector<2x4x256xf32>,
    return
  }
  func.func @transform_0(%arg0: i32) -> (i32, i32, i32) {
    %c0_i32 = arith.constant 0 : i32
    %c0_i32_0 = arith.constant 0 : i32
    %c0_i32_1 = arith.constant 0 : i32
    %c0_i32_2 = arith.constant 0 : i32
    return %c0_i32, %c0_i32_0, %c0_i32_1 : i32, i32, i32
  }
  func.func @transform_1(%arg0: i32) -> (i32, i32, i32) {
    %c0_i32 = arith.constant 0 : i32
    %c0_i32_0 = arith.constant 0 : i32
    %c0_i32_1 = arith.constant 0 : i32
    %c0_i32_2 = arith.constant 0 : i32
    return %c0_i32, %c0_i32_0, %c0_i32_1 : i32, i32, i32
  }
  func.func @transform_2(%arg0: i32) -> (i32, i32, i32) {
    %c0_i32 = arith.constant 0 : i32
    %c0_i32_0 = arith.constant 0 : i32
    %c0_i32_1 = arith.constant 0 : i32
    %c0_i32_2 = arith.constant 0 : i32
    return %c0_i32, %c0_i32_0, %c0_i32_1 : i32, i32, i32
  }
  func.func @transform_3(%arg0: i32) -> (i32, i32, i32) {
    %c0_i32 = arith.constant 0 : i32
    %c0_i32_0 = arith.constant 0 : i32
    %c0_i32_1 = arith.constant 0 : i32
    %c0_i32_2 = arith.constant 0 : i32
    return %c0_i32, %c0_i32_0, %c0_i32_1 : i32, i32, i32
  }
  func.func @transform_4(%arg0: i32) -> (i32, i32, i32) {
    %c0_i32 = arith.constant 0 : i32
    %c0_i32_0 = arith.constant 0 : i32
    %c0_i32_1 = arith.constant 0 : i32
    %c0_i32_2 = arith.constant 0 : i32
    return %c0_i32, %c0_i32_0, %c0_i32_1 : i32, i32, i32
  }
  func.func @transform_5(%arg0: i32) -> (i32, i32, i32) {
    %c0_i32 = arith.constant 0 : i32
    %c0_i32_0 = arith.constant 0 : i32
    %c0_i32_1 = arith.constant 0 : i32
    %c0_i32_2 = arith.constant 0 : i32
    return %c0_i32, %c0_i32_0, %c0_i32_1 : i32, i32, i32
  }
  func.func @transform_6(%arg0: i32) -> (i32, i32, i32) {
    %c0_i32 = arith.constant 0 : i32
    %c0_i32_0 = arith.constant 0 : i32
    %c0_i32_1 = arith.constant 0 : i32
    %c0_i32_2 = arith.constant 0 : i32
    return %c0_i32, %c0_i32_0, %c0_i32_1 : i32, i32, i32
  }
  func.func @transform_7(%arg0: i32) -> (i32, i32, i32) {
    %c0_i32 = arith.constant 0 : i32
    %c0_i32_0 = arith.constant 0 : i32
    %c0_i32_1 = arith.constant 0 : i32
    %c0_i32_2 = arith.constant 0 : i32
    return %c0_i32, %c0_i32_0, %c0_i32_1 : i32, i32, i32
  }
  func.func @transform_8(%arg0: i32) -> (i32, i32, i32) {
    %c0_i32 = arith.constant 0 : i32
    %c0_i32_0 = arith.constant 0 : i32
    %c0_i32_1 = arith.constant 0 : i32
    %c0_i32_2 = arith.constant 0 : i32
    return %c0_i32, %c0_i32_0, %c0_i32_1 : i32, i32, i32
  }
}

</mosaic_0001>

<bundles_post_ra>
// kernel: tpu_custom_call.1
= control target key start
LH: loop header
LB: loop body
LE: loop exit
PB: predicated region body
PF: predicated region fallthrough
CT: control target
= control target key end

     0   :  { %s3729_s9 = smov 16   ;;  %v3730_v4 = vmov 0.0   ;;  %s4481_s0 = inlined_call_operand.vmem [shape: f32[2,4,256], index: 0, kind: input, shape index: {}]   ;;  %s4482_s1 = inlined_call_operand.vmem [shape: f32[9,1,256], index: 1, kind: input, shape index: {}]   ;;  %s4483_s2 = inlined_call_operand.vmem [shape: f32[9,4,4], index: 2, kind: input, shape index: {}]   ;;  %s4484_s3 = inlined_call_operand.vmem [shape: f32[9,4,4], index: 3, kind: input, shape index: {}]   ;;  %s4485_s4 = inlined_call_operand.vmem [shape: f32[1,4,1], index: 4, kind: input, shape index: {}]   ;;  %s4486_s5 = inlined_call_operand.vmem [shape: f32[1,4,1], index: 5, kind: input, shape index: {}]   ;;  %s4487_s6 = inlined_call_operand.vmem [shape: f32[1,4,1], index: 6, kind: input, shape index: {}]   ;;  %s4488_s7 = inlined_call_operand.vmem [shape: f32[1,4,1], index: 7, kind: input, shape index: {}]   ;;  %s4489_s8 = inlined_call_operand.hbm [shape: f32[2,4,256], index: 8, kind: output, shape index: {}]  }
   0x1   :  { %v3790_v0 = vld [vmem:[%s4481_s0 + $0x8] sm:$0xff]  ;;  %v3795_v1 = vld [vmem:[%s4481_s0] sm:$0xff]  ;;  %158 = vmatprep.mubr.f32.mxu0 %v3730_v4  ;;  %1052 = vmatprep.mubr.f32.mxu1 %v3730_v4 }
   0x2   :  { %974 = vrot.lane.b32.xlu1 %v3790_v0, %s3729_s9  ;;  %59 = vrot.lane.b32.xlu0 %v3795_v1, %s3729_s9  ;;  %v3803_v2 = vcombine.high %v3790_v0, %v3790_v0  ;;  %v3807_v3 = vcombine.high %v3795_v1, %v3795_v1 }
   0x6   :  { %976 = vrot.lane.b32.xlu1 %v3803_v2, %s3729_s9  ;;  %61 = vrot.lane.b32.xlu0 %v3807_v3, %s3729_s9 }
   0x7   :  { %13 = vsyncpa [#allocation3], 0  ;;  %s3731_s10 = smov 17   ;;  %s3732_s11 = smov 15   ;;  %v39_v5 = vlaneseq  ;;  %v3487_v10 = vld [vmem:[%s4482_s1 + $0x2] sm:$0x3] }
   0x8   :  { %s3733_s12 = smov 1   ;;  %s3734_s13 = smov 127   ;;  %v44_v13 = vld [vmem:[%s4482_s1] sm:$0x3]  ;;  %vm87_vm1 = vcmask 1043456   ;;  %vm83_vm3 = vcmask 31744  }
   0x9   :  { %s3735_s14 = smov 113   ;;  %s3736_s15 = smov 112   ;;  %v47_v6 = vshrl.u32 %v39_v5, 7  ;;  %v3871_v7 = vand.u32 127, %v39_v5  ;;  %v3488_v28 = vld [vmem:[%s4483_s2 + $0x4] sm:$0xf] }
   0xa   :  { %37 = vrot.lane.b32.xlu1 %v3807_v3, %s3731_s10  ;;  %35 = vrot.lane.b32.xlu0 %v3795_v1, %s3731_s10  ;;  %s3737_s16 = smov 111   ;;  %v3495_v35 = vld [vmem:[%s4482_s1 + $0x4] sm:$0x3]  ;;  %v58_v44 = vld [vmem:[%s4483_s2] sm:$0xf]  ;;  %s3739_s22 = smov [#allocation2]  }
   0xb   :  { %v3873_v8 = vsub.s32 0, %v47_v6  ;;  %v3875_v9 = vsub.s32 1, %v47_v6  ;;  %vm63_vm0 = vcmp.lt.s32.totalorder %v3871_v7, 16  ;;  %vm41_vm2 = vcmp.lt.s32.totalorder %v3871_v7, 17  ;;  %v3500_v51 = vld [vmem:[%s4482_s1 + $0x6] sm:$0x3] }
   0xc   :  { %vm249_vm4 = vcmp.lt.s32.totalorder %v3871_v7, 15  ;;  %vm355_vm5 = vcmp.lt.s32.totalorder %v3871_v7, 1  ;;  %v3496_v60 = vld [vmem:[%s4483_s2 + $0x8] sm:$0xf]  ;;  %vm543_vm6 = vcmp.lt.s32.totalorder %v3871_v7, 127  ;;  %vm649_vm7 = vcmp.lt.s32.totalorder %v3871_v7, 113 }
   0xd   :  { %v3885_v14 = vrot.slane %v3487_v10, %v3873_v8  ;;  %v3888_v15 = vrot.slane %v3487_v10, %v3875_v9  ;;  %v3892_v18 = vrot.slane %v44_v13, %v3873_v8  ;;  %v3895_v19 = vrot.slane %v44_v13, %v3875_v9  ;;  %s3476_s23 = sshll.u32 %s3739_s22, 4  ;;  %s3477_s23 = int_to_ptr.vmem [resolvable:$true] %s3476_s23 }
   0xe   :  { %968 = vrot.lane.b32.xlu1 %v3803_v2, %s3731_s10  ;;  %966 = vrot.lane.b32.xlu0 %v3790_v0, %s3731_s10  ;;  %v3939_v42 = vrot.slane %v3495_v35, %v3873_v8  ;;  %v3942_v43 = vrot.slane %v3495_v35, %v3875_v9  ;;  %v3972_v58 = vrot.slane %v3500_v51, %v3873_v8  ;;  %vm755_vm8 = vcmp.lt.s32.totalorder %v3871_v7, 112  ;;  %s3705_s24 = scalar_lea.vmem %s3477_s23, 256  ;;  %p3710_p1 = scmp.lt.s32.totalorder %s3477_s23, %s3477_s23 }
   0xf   :  { %v3975_v59 = vrot.slane %v3500_v51, %v3875_v9  ;;  %vm861_vm9 = vcmp.lt.s32.totalorder %v3871_v7, 111  ;;  %v3587_v7 = vld [vmem:[%s4484_s3 + $0x20] sm:$0xf]  ;;  %p3706_p0 = scmp.ne.s32.totalorder %s3477_s23, %s3705_s24  ;;  %p3711_p2 = scmp.lt.s32.totalorder %s3705_s24, %s3705_s24 }
  0x11   :  { %p3712_p3 = por %p3711_p2, %p3710_p1 }
  0x12   :  { %247 = vrot.lane.b32.xlu1 %v3807_v3, %s3732_s11  ;;  %245 = vrot.lane.b32.xlu0 %v3795_v1, %s3732_s11 }
  0x13   :  { %p3713_p4 = pnand %p3712_p3, %p3706_p0 }
  0x16   :  { %1138 = vrot.lane.b32.xlu1 %v3803_v2, %s3732_s11  ;;  %1136 = vrot.lane.b32.xlu0 %v3790_v0, %s3732_s11 }
  0x1a   :  { %353 = vrot.lane.b32.xlu1 %v3807_v3, %s3733_s12  ;;  %351 = vrot.lane.b32.xlu0 %v3795_v1, %s3733_s12 }
  0x1e   :  { %1225 = vrot.lane.b32.xlu1 %v3803_v2, %s3733_s12  ;;  %1223 = vrot.lane.b32.xlu0 %v3790_v0, %s3733_s12 }
  0x22   :  { %541 = vrot.lane.b32.xlu1 %v3807_v3, %s3734_s13  ;;  %539 = vrot.lane.b32.xlu0 %v3795_v1, %s3734_s13 }
  0x26   :  { %1389 = vrot.lane.b32.xlu1 %v3803_v2, %s3734_s13  ;;  %1387 = vrot.lane.b32.xlu0 %v3790_v0, %s3734_s13 }
  0x2a   :  { %647 = vrot.lane.b32.xlu1 %v3807_v3, %s3735_s14  ;;  %645 = vrot.lane.b32.xlu0 %v3795_v1, %s3735_s14 }
  0x2e   :  { %1476 = vrot.lane.b32.xlu1 %v3803_v2, %s3735_s14  ;;  %1474 = vrot.lane.b32.xlu0 %v3790_v0, %s3735_s14 }
  0x32   :  { %753 = vrot.lane.b32.xlu1 %v3807_v3, %s3736_s15  ;;  %751 = vrot.lane.b32.xlu0 %v3795_v1, %s3736_s15 }
  0x36   :  { %1563 = vrot.lane.b32.xlu1 %v3803_v2, %s3736_s15  ;;  %1561 = vrot.lane.b32.xlu0 %v3790_v0, %s3736_s15 }
  0x3a   :  { %859 = vrot.lane.b32.xlu1 %v3807_v3, %s3737_s16  ;;  %857 = vrot.lane.b32.xlu0 %v3795_v1, %s3737_s16 }
  0x3e   :  { %1650 = vrot.lane.b32.xlu1 %v3803_v2, %s3737_s16  ;;  %1648 = vrot.lane.b32.xlu0 %v3790_v0, %s3737_s16 }
  0x74   :  { %v975_v11 = vpop.permute.xlu1 %974  ;;  %v60_v12 = vpop.permute.xlu0 %59 }
  0x78   :  { %v977_v16 = vpop.permute.xlu1 %976  ;;  %v62_v17 = vpop.permute.xlu0 %61 }
  0x79   :  { %v978_v20 = vsel %vm63_vm0, %v975_v11, %v977_v16  ;;  %v979_v21 = vsel %vm63_vm0, %v977_v16, %v975_v11  ;;  %v64_v22 = vsel %vm63_vm0, %v60_v12, %v62_v17  ;;  %v65_v23 = vsel %vm63_vm0, %v62_v17, %v60_v12  ;;  %v3509_v11 = vld [vmem:[%s4482_s1 + $0xa] sm:$0x3] }
  0x7a   :  { %v980_v24 = vmul.f32 %v979_v21, %v3885_v14  ;;  %v79_v25 = vmul.f32 %v3885_v14, %v65_v23  ;;  %v981_v26 = vmul.f32 %v978_v20, %v3888_v15  ;;  %v80_v27 = vmul.f32 %v3888_v15, %v64_v22  ;;  %v3501_v23 = vld [vmem:[%s4483_s2 + $0xc] sm:$0xf] }
  0x7b   :  { %v4007_v22 = vrot.slane %v3509_v11, %v3875_v9 }
  0x7c   :  { %3529 = vmatprep.subr.msk.mxu1 %vm87_vm1, %v981_v26  ;;  %v38_v29 = vpop.permute.xlu1 %37  ;;  %3489 = vmatprep.subr.msk.mxu0 %vm87_vm1, %v80_v27  ;;  %v36_v30 = vpop.permute.xlu0 %35 }
  0x7d   :  { %v42_v31 = vsel %vm41_vm2, %v36_v30, %v38_v29  ;;  %v43_v32 = vsel %vm41_vm2, %v38_v29, %v36_v30  ;;  %3490 = vmatpush1.msk.msra.mxu0 %vm87_vm1, %v79_v25  ;;  %3530 = vmatpush1.msk.msra.mxu1 %vm87_vm1, %v980_v24  ;;  %v3514_v29 = vld [vmem:[%s4482_s1 + $0xc] sm:$0x3] }
  0x7e   :  { %v56_v33 = vmul.f32 %v3892_v18, %v43_v32  ;;  %v57_v34 = vmul.f32 %v3895_v19, %v42_v31  ;;  %3491 = vmatmul.mubr.msk.f32.vlgmr.msra.gmra.mrb[0].mxu0 %vm83_vm3, %v3488_v28  ;;  %3531 = vmatmul.mubr.msk.f32.vlgmr.msra.gmra.mrb[0].mxu1 %vm83_vm3, %v3488_v28  ;;  %v4022_v28 = vrot.slane %v3509_v11, %v3873_v8 }
  0x7f   :  { %238 = vmatprep.mubr.f32.mxu0 %v3730_v4  ;;  %1129 = vmatprep.mubr.f32.mxu1 %v3730_v4  ;;  %v4043_v35 = vrot.slane %v3514_v29, %v3875_v9 }
  0x80   :  { %v969_v36 = vpop.permute.xlu1 %968  ;;  %v967_v37 = vpop.permute.xlu0 %966  ;;  %3492 = vmatprep.subr.msk.mxu0 %vm87_vm1, %v57_v34 }
  0x81   :  { %v970_v38 = vsel %vm41_vm2, %v967_v37, %v969_v36  ;;  %v971_v39 = vsel %vm41_vm2, %v969_v36, %v967_v37  ;;  %3493 = vmatpush1.msk.msra.mxu0 %vm87_vm1, %v56_v33  ;;  %v3505_v36 = vld [vmem:[%s4483_s2 + $0x10] sm:$0xf] }
  0x82   :  { %v972_v40 = vmul.f32 %v971_v39, %v3892_v18  ;;  %v973_v41 = vmul.f32 %v970_v38, %v3895_v19 }
  0x84   :  { %v248_v45 = vpop.permute.xlu1 %247  ;;  %3532 = vmatprep.subr.msk.mxu1 %vm87_vm1, %v973_v41  ;;  %v246_v46 = vpop.permute.xlu0 %245 }
  0x85   :  { %v250_v47 = vsel %vm249_vm4, %v246_v46, %v248_v45  ;;  %v251_v48 = vsel %vm249_vm4, %v248_v45, %v246_v46  ;;  %3533 = vmatpush1.msk.msra.mxu1 %vm87_vm1, %v972_v40  ;;  %v3519_v45 = vld [vmem:[%s4482_s1 + $0xe] sm:$0x3] }
  0x86   :  { %v265_v49 = vmul.f32 %v3939_v42, %v251_v48  ;;  %v266_v50 = vmul.f32 %v3942_v43, %v250_v47  ;;  %3494 = vmatmul.mubr.msk.f32.vlgmr.msra.gmra.mrb[0].mxu0 %vm83_vm3, %v58_v44  ;;  %3534 = vmatmul.mubr.msk.f32.vlgmr.msra.gmra.mrb[0].mxu1 %vm83_vm3, %v58_v44  ;;  %v4058_v44 = vrot.slane %v3514_v29, %v3873_v8 }
  0x87   :  { %342 = vmatprep.mubr.f32.mxu0 %v3730_v4  ;;  %1214 = vmatprep.mubr.f32.mxu1 %v3730_v4 }
  0x88   :  { %v1139_v52 = vpop.permute.xlu1 %1138  ;;  %v1137_v53 = vpop.permute.xlu0 %1136  ;;  %3497 = vmatprep.subr.msk.mxu0 %vm87_vm1, %v266_v50 }
  0x89   :  { %v1140_v54 = vsel %vm249_vm4, %v1137_v53, %v1139_v52  ;;  %v1141_v55 = vsel %vm249_vm4, %v1139_v52, %v1137_v53  ;;  %3498 = vmatpush1.msk.msra.mxu0 %vm87_vm1, %v265_v49  ;;  %v4076_v52 = vrot.slane %v3519_v45, %v3875_v9 }
  0x8a   :  { %v1142_v56 = vmul.f32 %v1141_v55, %v3939_v42  ;;  %v1143_v57 = vmul.f32 %v1140_v54, %v3942_v43  ;;  %v3510_v54 = vld [vmem:[%s4483_s2 + $0x14] sm:$0xf] }
  0x8c   :  { %v354_v61 = vpop.permute.xlu1 %353  ;;  %3535 = vmatprep.subr.msk.mxu1 %vm87_vm1, %v1143_v57  ;;  %v352_v62 = vpop.permute.xlu0 %351 }
  0x8d   :  { %v356_v63 = vsel %vm355_vm5, %v352_v62, %v354_v61  ;;  %v357_v5 = vsel %vm355_vm5, %v354_v61, %v352_v62  ;;  %3536 = vmatpush1.msk.msra.mxu1 %vm87_vm1, %v1142_v56  ;;  %v4091_v62 = vrot.slane %v3519_v45, %v3873_v8 }
  0x8e   :  { %v371_v6 = vmul.f32 %v3972_v58, %v357_v5  ;;  %v372_v10 = vmul.f32 %v3975_v59, %v356_v63  ;;  %3499 = vmatmul.mubr.msk.f32.vlgmr.msra.gmra.mrb[0].mxu0 %vm83_vm3, %v3496_v60  ;;  %3537 = vmatmul.mubr.msk.f32.vlgmr.msra.gmra.mrb[0].mxu1 %vm83_vm3, %v3496_v60  ;;  %v3524_v63 = vld [vmem:[%s4482_s1 + $0x10] sm:$0x3] }
  0x8f   :  { %448 = vmatprep.mubr.f32.mxu0 %v3730_v4  ;;  %1301 = vmatprep.mubr.f32.mxu1 %v3730_v4 }
  0x90   :  { %v1226_v12 = vpop.permute.xlu1 %1225  ;;  %v1224_v13 = vpop.permute.xlu0 %1223  ;;  %3502 = vmatprep.subr.msk.mxu0 %vm87_vm1, %v372_v10 }
  0x91   :  { %v1227_v16 = vsel %vm355_vm5, %v1224_v13, %v1226_v12  ;;  %v1228_v17 = vsel %vm355_vm5, %v1226_v12, %v1224_v13  ;;  %3503 = vmatpush1.msk.msra.mxu0 %vm87_vm1, %v371_v6 }
  0x92   :  { %v1229_v20 = vmul.f32 %v1228_v17, %v3972_v58  ;;  %v1230_v21 = vmul.f32 %v1227_v16, %v3975_v59  ;;  %3506 = vmatprep.subr.msk.mxu0 %vm87_vm1, %v3807_v3  ;;  %v4109_v16 = vrot.slane %v3524_v63, %v3875_v9 }
  0x94   :  { %3538 = vmatprep.subr.msk.mxu1 %vm87_vm1, %v1230_v21  ;;  %v542_v24 = vpop.permute.xlu1 %541  ;;  %v540_v25 = vpop.permute.xlu0 %539 }
  0x95   :  { %3539 = vmatpush1.msk.msra.mxu1 %vm87_vm1, %v1229_v20  ;;  %v545_v26 = vsel %vm543_vm6, %v542_v24, %v540_v25  ;;  %v544_v30 = vsel %vm543_vm6, %v540_v25, %v542_v24  ;;  %v3515_v20 = vld [vmem:[%s4483_s2 + $0x18] sm:$0xf] }
  0x96   :  { %3504 = vmatmul.mubr.msk.f32.vlgmr.msra.gmra.mrb[0].mxu0 %vm83_vm3, %v3501_v23  ;;  %3540 = vmatmul.mubr.msk.f32.vlgmr.msra.gmra.mrb[0].mxu1 %vm83_vm3, %v3501_v23  ;;  %v560_v27 = vmul.f32 %v4007_v22, %v545_v26  ;;  %v4124_v26 = vrot.slane %v3524_v63, %v3873_v8 }
  0x97   :  { %3541 = vmatprep.subr.msk.mxu1 %vm87_vm1, %v3803_v2  ;;  %3507 = vmatpush1.msk.msra.mxu0 %vm87_vm1, %v3795_v1 }
  0x98   :  { %530 = vmatprep.mubr.f32.mxu0 %v3730_v4  ;;  %3542 = vmatpush1.msk.msra.mxu1 %vm87_vm1, %v3790_v0  ;;  %v1390_v31 = vpop.permute.xlu1 %1389  ;;  %v1388_v32 = vpop.permute.xlu0 %1387  ;;  %v559_v0 = vmul.f32 %v4022_v28, %v544_v30 }
  0x99   :  { %1378 = vmatprep.mubr.f32.mxu1 %v3730_v4  ;;  %v1391_v33 = vsel %vm543_vm6, %v1388_v32, %v1390_v31  ;;  %v1392_v1 = vsel %vm543_vm6, %v1390_v31, %v1388_v32  ;;  %3511 = vmatprep.subr.msk.mxu0 %vm87_vm1, %v560_v27 }
  0x9a   :  { %v1394_v34 = vmul.f32 %v1392_v1, %v4007_v22  ;;  %v1393_v37 = vmul.f32 %v1391_v33, %v4022_v28  ;;  %v3520_v1 = vld [vmem:[%s4483_s2 + $0x1c] sm:$0xf] }
  0x9c   :  { %v648_v38 = vpop.permute.xlu1 %647  ;;  %3544 = vmatprep.subr.msk.mxu1 %vm87_vm1, %v1394_v34  ;;  %v646_v39 = vpop.permute.xlu0 %645 }
  0x9d   :  { %v651_v40 = vsel %vm649_vm7, %v648_v38, %v646_v39  ;;  %v650_v46 = vsel %vm649_vm7, %v646_v39, %v648_v38 }
  0x9e   :  { %3508 = vmatmul.mubr.msk.f32.vlgmr.msra.gmra.mrb[0].mxu0 %vm83_vm3, %v3505_v36  ;;  %3543 = vmatmul.mubr.msk.f32.vlgmr.msra.gmra.mrb[0].mxu1 %vm83_vm3, %v3505_v36  ;;  %v666_v41 = vmul.f32 %v4043_v35, %v651_v40  ;;  %v665_v53 = vmul.f32 %v4058_v44, %v650_v46  ;;  %v3738_v36 = vmov 0  }
  0x9f   :  { %3512 = vmatpush1.msk.msra.mxu0 %vm87_vm1, %v559_v0  ;;  %636 = vmatprep.mubr.f32.mxu0 %v3730_v4  ;;  %v3525_v0 = vld [vmem:[%s4483_s2 + $0x20] sm:$0xf] }
  0xa0   :  { %3545 = vmatpush1.msk.msra.mxu1 %vm87_vm1, %v1393_v37  ;;  %1465 = vmatprep.mubr.f32.mxu1 %v3730_v4  ;;  %v1477_v47 = vpop.permute.xlu1 %1476  ;;  %v1475_v48 = vpop.permute.xlu0 %1474 }
  0xa1   :  { %v1478_v49 = vsel %vm649_vm7, %v1475_v48, %v1477_v47  ;;  %v1479_v50 = vsel %vm649_vm7, %v1477_v47, %v1475_v48  ;;  %3516 = vmatprep.subr.msk.mxu0 %vm87_vm1, %v666_v41  ;;  %3695 = vset.pattern.permute.xlu1 %v3738_v36 }
  0xa2   :  { %v1481_v51 = vmul.f32 %v1479_v50, %v4043_v35  ;;  %v1480_v55 = vmul.f32 %v1478_v49, %v4058_v44  ;;  %3696 = vset.pattern.permute.xlu0 %v3738_v36 }
  0xa4   :  { %v754_v56 = vpop.permute.xlu1 %753  ;;  %3547 = vmatprep.subr.msk.mxu1 %vm87_vm1, %v1481_v51  ;;  %v752_v57 = vpop.permute.xlu0 %751 }
  0xa5   :  { %v757_v60 = vsel %vm755_vm8, %v754_v56, %v752_v57  ;;  %v756_v5 = vsel %vm755_vm8, %v752_v57, %v754_v56 }
  0xa6   :  { %3513 = vmatmul.mubr.msk.f32.vlgmr.msra.gmra.mrb[0].mxu0 %vm83_vm3, %v3510_v54  ;;  %3546 = vmatmul.mubr.msk.f32.vlgmr.msra.gmra.mrb[0].mxu1 %vm83_vm3, %v3510_v54  ;;  %v772_v61 = vmul.f32 %v4076_v52, %v757_v60  ;;  %v771_v17 = vmul.f32 %v4091_v62, %v756_v5  ;;  %v1779_v5 = vld [vmem:[%s4485_s4] sm:$0xf] }
  0xa7   :  { %3517 = vmatpush1.msk.msra.mxu0 %vm87_vm1, %v665_v53  ;;  %742 = vmatprep.mubr.f32.mxu0 %v3730_v4 }
  0xa8   :  { %3548 = vmatpush1.msk.msra.mxu1 %vm87_vm1, %v1480_v55  ;;  %1552 = vmatprep.mubr.f32.mxu1 %v3730_v4  ;;  %v1564_v6 = vpop.permute.xlu1 %1563  ;;  %v1562_v10 = vpop.permute.xlu0 %1561 }
  0xa9   :  { %v1565_v11 = vsel %vm755_vm8, %v1562_v10, %v1564_v6  ;;  %v1566_v12 = vsel %vm755_vm8, %v1564_v6, %v1562_v10  ;;  %3521 = vmatprep.subr.msk.mxu0 %vm87_vm1, %v772_v61  ;;  %v1789_v6 = vld [vmem:[%s4486_s5] sm:$0xf] }
  0xaa   :  { %v1568_v13 = vmul.f32 %v1566_v12, %v4076_v52  ;;  %v1567_v21 = vmul.f32 %v1565_v11, %v4091_v62 }
  0xac   :  { %v860_v23 = vpop.permute.xlu1 %859  ;;  %3550 = vmatprep.subr.msk.mxu1 %vm87_vm1, %v1568_v13  ;;  %v858_v24 = vpop.permute.xlu0 %857 }
  0xad   :  { %v863_v25 = vsel %vm861_vm9, %v860_v23, %v858_v24  ;;  %v862_v27 = vsel %vm861_vm9, %v858_v24, %v860_v23 }
  0xae   :  { %3518 = vmatmul.mubr.msk.f32.vlgmr.msra.gmra.mrb[0].mxu0 %vm83_vm3, %v3515_v20  ;;  %3549 = vmatmul.mubr.msk.f32.vlgmr.msra.gmra.mrb[0].mxu1 %vm83_vm3, %v3515_v20  ;;  %v878_v9 = vmul.f32 %v4109_v16, %v863_v25  ;;  %v877_v33 = vmul.f32 %v4124_v26, %v862_v27 }
  0xaf   :  { %3522 = vmatpush1.msk.msra.mxu0 %vm87_vm1, %v771_v17  ;;  %848 = vmatprep.mubr.f32.mxu0 %v3730_v4 }
  0xb0   :  { %3551 = vmatpush1.msk.msra.mxu1 %vm87_vm1, %v1567_v21  ;;  %1639 = vmatprep.mubr.f32.mxu1 %v3730_v4  ;;  %v1651_v29 = vpop.permute.xlu1 %1650  ;;  %v1649_v30 = vpop.permute.xlu0 %1648 }
  0xb1   :  { %v1652_v31 = vsel %vm861_vm9, %v1649_v30, %v1651_v29  ;;  %v1653_v32 = vsel %vm861_vm9, %v1651_v29, %v1649_v30  ;;  %3526 = vmatprep.subr.msk.mxu0 %vm87_vm1, %v878_v9 }
  0xb2   :  { %v1655_v8 = vmul.f32 %v1653_v32, %v4109_v16  ;;  %v1654_v34 = vmul.f32 %v1652_v31, %v4124_v26 }
  0xb4   :  { %3553 = vmatprep.subr.msk.mxu1 %vm87_vm1, %v1655_v8 }
  0xb6   :  { %3523 = vmatmul.mubr.msk.f32.vlgmr.msra.gmra.mrb[0].mxu0 %vm83_vm3, %v3520_v1  ;;  %3552 = vmatmul.mubr.msk.f32.vlgmr.msra.gmra.mrb[0].mxu1 %vm83_vm3, %v3520_v1 }
  0xb7   :  { %3527 = vmatpush1.msk.msra.mxu0 %vm87_vm1, %v877_v33  ;;  %954 = vmatprep.mubr.f32.mxu0 %v3730_v4 }
  0xb8   :  { %3554 = vmatpush1.msk.msra.mxu1 %vm87_vm1, %v1654_v34  ;;  %1726 = vmatprep.mubr.f32.mxu1 %v3730_v4 }
  0xbe   :  { %3528 = vmatmul.mubr.msk.f32.vlgmr.msra.gmra.mrb[0].mxu0 %vm83_vm3, %v3525_v0  ;;  %3555 = vmatmul.mubr.msk.f32.vlgmr.msra.gmra.mrb[0].mxu1 %vm83_vm3, %v3525_v0 }
  0xbf   :  { %1895 = vmatprep.mubr.f32.mxu0 %v3730_v4  ;;  %2704 = vmatprep.mubr.f32.mxu1 %v3730_v4 }
 0x191   :  { %v956_v37 = vpop.f32.mrb[0].mxu0  ;;  %v1728_v38 = vpop.f32.mrb[0].mxu1 }
 0x192   :  { %v1748_v39 = vmul.f32 %v956_v37, %v956_v37  ;;  %v1750_v40 = vmul.f32 %v1728_v38, %v1728_v38  ;;  %v958_v41 = vpop.f32.mrb[1].mxu0  ;;  %v1730_v45 = vpop.f32.mrb[1].mxu1  ;;  %v1735_v46 = vsel %vm87_vm1, %v956_v37, 0.0  ;;  %v1740_v47 = vsel %vm87_vm1, %v1728_v38, 0.0 }
 0x193   :  { %v1749_v48 = vmul.f32 %v958_v41, %v958_v41  ;;  %v1751_v49 = vmul.f32 %v1730_v45, %v1730_v45  ;;  %v1736_v50 = vsel %vm87_vm1, %v958_v41, 0.0  ;;  %v1741_v51 = vsel %vm87_vm1, %v1730_v45, 0.0 }
 0x194   :  { %v1737_v53 = vadd.f32 %v1736_v50, %v1735_v46  ;;  %v1742_v54 = vadd.f32 %v1741_v51, %v1740_v47  ;;  %v1752_v55 = vsel %vm87_vm1, %v1748_v39, 0.0  ;;  %v1757_v56 = vsel %vm87_vm1, %v1750_v40, 0.0 }
 0x195   :  { %v1753_v57 = vsel %vm87_vm1, %v1749_v48, 0.0  ;;  %v1758_v60 = vsel %vm87_vm1, %v1751_v49, 0.0 }
 0x196   :  { %1738 = vadd.xlane.f32.xlu0 %v1737_v53  ;;  %1743 = vadd.xlane.f32.xlu1 %v1742_v54  ;;  %v1754_v61 = vadd.f32 %v1753_v57, %v1752_v55  ;;  %v1759_v63 = vadd.f32 %v1758_v60, %v1757_v56 }
 0x19a   :  { %1755 = vadd.xlane.f32.xlu0 %v1754_v61 }
 0x19e   :  { %1760 = vadd.xlane.f32.xlu0 %v1759_v63 }
 0x1a7   :  { %1782 = vperm.xlu1 %3695, %v1779_v5  }
 0x1b4   :  { %1792 = vperm.xlu0 %3696, %v1789_v6  }
 0x223   :  { %v1744_v10 = vpop.xlane.xlu1 %1743  ;;  %v1739_v11 = vpop.xlane.xlu0 %1738 }
 0x224   :  { %v1746_v12 = vsel %vm87_vm1, %v1744_v10, 0.0  ;;  %v1745_v13 = vsel %vm87_vm1, %v1739_v11, 0.0  ;;  %v3556_v10 = vld [vmem:[%s4484_s3 + $0x4] sm:$0xf] }
 0x225   :  { %v1747_v17 = vadd.f32 %v1746_v12, %v1745_v13 }
 0x227   :  { %v1756_v20 = vpop.xlane.xlu0 %1755  ;;  %v1765_v21 = vmul.f32 0.001953125, %v1747_v17  ;;  %v1783_v34 = vpop.permute.xlu1 %1782 }
 0x228   :  { %v1762_v24 = vsel %vm87_vm1, %v1756_v20, 0.0 }
 0x229   :  { %v1767_v27 = vmul.f32 %v1765_v21, %v1765_v21  ;;  %v1769_v32 = vsub.f32 %v956_v37, %v1765_v21  ;;  %v1770_v8 = vsub.f32 %v958_v41, %v1765_v21  ;;  %v1771_v33 = vsub.f32 %v1728_v38, %v1765_v21 }
 0x22a   :  { %v1772_v49 = vsub.f32 %v1730_v45, %v1765_v21 }
 0x22b   :  { %v1761_v23 = vpop.xlane.xlu0 %1760 }
 0x22c   :  { %v1763_v25 = vsel %vm87_vm1, %v1761_v23, 0.0 }
 0x22d   :  { %v1764_v9 = vadd.f32 %v1763_v25, %v1762_v24 }
 0x22f   :  { %v1766_v29 = vmul.f32 0.001953125, %v1764_v9 }
 0x231   :  { %v1768_v30 = vsub.f32 %v1766_v29, %v1767_v27 }
 0x233   :  { %v1773_v31 = vadd.f32 1e-05, %v1768_v30  ;;  %v1793_v40 = vpop.permute.xlu0 %1792 }
 0x235   :  { %3699 = vrsqrt.f32 %v1773_v31  ;;  %v1811_v31 = vld [vmem:[%s4484_s3] sm:$0xf] }
 0x23f   :  { %v3700_v1 = vpop.eup %3699 }
 0x240   :  { %v1775_v0 = vmul.f32 %v3700_v1, %v1769_v32  ;;  %v1776_v36 = vmul.f32 %v3700_v1, %v1770_v8  ;;  %v1777_v39 = vmul.f32 %v3700_v1, %v1771_v33  ;;  %v1778_v51 = vmul.f32 %v3700_v1, %v1772_v49 }
 0x242   :  { %v1785_v46 = vmul.f32 %v1783_v34, %v1775_v0  ;;  %v1786_v47 = vmul.f32 %v1783_v34, %v1776_v36  ;;  %v1787_v48 = vmul.f32 %v1783_v34, %v1777_v39  ;;  %v1788_v37 = vmul.f32 %v1783_v34, %v1778_v51 }
 0x244   :  { %v1795_v50 = vadd.f32 %v1793_v40, %v1785_v46  ;;  %v1796_v53 = vadd.f32 %v1793_v40, %v1786_v47  ;;  %v1797_v54 = vadd.f32 %v1793_v40, %v1787_v48  ;;  %v1798_v45 = vadd.f32 %v1793_v40, %v1788_v37 }
 0x246   :  { %v4174_v55 = vmax.f32 %v1795_v50, 0.0  ;;  %v4180_v38 = vmax.f32 %v1796_v53, 0.0  ;;  %v4182_v41 = vmax.f32 %v1797_v54, 0.0  ;;  %v4192_v56 = vmax.f32 %v1798_v45, 0.0 }
 0x248   :  { %1982 = vrot.lane.b32.xlu0 %v4174_v55, %s3732_s11  ;;  %1812 = vrot.lane.b32.xlu1 %v4174_v55, %s3729_s9 }
 0x24c   :  { %2788 = vrot.lane.b32.xlu0 %v4182_v41, %s3732_s11  ;;  %1814 = vrot.lane.b32.xlu1 %v4180_v38, %s3729_s9 }
 0x250   :  { %2074 = vrot.lane.b32.xlu0 %v4174_v55, %s3733_s12  ;;  %2626 = vrot.lane.b32.xlu1 %v4182_v41, %s3729_s9 }
 0x254   :  { %2875 = vrot.lane.b32.xlu0 %v4182_v41, %s3733_s12  ;;  %2628 = vrot.lane.b32.xlu1 %v4192_v56, %s3729_s9 }
 0x258   :  { %2250 = vrot.lane.b32.xlu0 %v4174_v55, %s3734_s13  ;;  %1803 = vrot.lane.b32.xlu1 %v4174_v55, %s3731_s10 }
 0x25c   :  { %3041 = vrot.lane.b32.xlu0 %v4182_v41, %s3734_s13  ;;  %1805 = vrot.lane.b32.xlu1 %v4180_v38, %s3731_s10 }
 0x260   :  { %2342 = vrot.lane.b32.xlu0 %v4174_v55, %s3735_s14  ;;  %2618 = vrot.lane.b32.xlu1 %v4182_v41, %s3731_s10 }
 0x264   :  { %3128 = vrot.lane.b32.xlu0 %v4182_v41, %s3735_s14  ;;  %2620 = vrot.lane.b32.xlu1 %v4192_v56, %s3731_s10 }
 0x268   :  { %2434 = vrot.lane.b32.xlu0 %v4174_v55, %s3736_s15  ;;  %1984 = vrot.lane.b32.xlu1 %v4180_v38, %s3732_s11 }
 0x26c   :  { %3215 = vrot.lane.b32.xlu0 %v4182_v41, %s3736_s15  ;;  %2790 = vrot.lane.b32.xlu1 %v4192_v56, %s3732_s11 }
 0x270   :  { %2526 = vrot.lane.b32.xlu0 %v4174_v55, %s3737_s16  ;;  %2076 = vrot.lane.b32.xlu1 %v4180_v38, %s3733_s12 }
 0x274   :  { %3302 = vrot.lane.b32.xlu0 %v4182_v41, %s3737_s16  ;;  %2877 = vrot.lane.b32.xlu1 %v4192_v56, %s3733_s12 }
 0x278   :  { %2252 = vrot.lane.b32.xlu1 %v4180_v38, %s3734_s13 }
 0x27c   :  { %3043 = vrot.lane.b32.xlu1 %v4192_v56, %s3734_s13 }
 0x280   :  { %2344 = vrot.lane.b32.xlu1 %v4180_v38, %s3735_s14 }
 0x284   :  { %3130 = vrot.lane.b32.xlu1 %v4192_v56, %s3735_s14 }
 0x288   :  { %2436 = vrot.lane.b32.xlu1 %v4180_v38, %s3736_s15 }
 0x28c   :  { %3217 = vrot.lane.b32.xlu1 %v4192_v56, %s3736_s15 }
 0x290   :  { %2528 = vrot.lane.b32.xlu1 %v4180_v38, %s3737_s16 }
 0x294   :  { %3304 = vrot.lane.b32.xlu1 %v4192_v56, %s3737_s16 }
 0x2ba   :  { %v1813_v57 = vpop.permute.xlu1 %1812  ;;  %v1983_v12 = vpop.permute.xlu0 %1982 }
 0x2be   :  { %v1815_v60 = vpop.permute.xlu1 %1814  ;;  %v2789_v24 = vpop.permute.xlu0 %2788 }
 0x2bf   :  { %v1816_v61 = vsel %vm63_vm0, %v1813_v57, %v1815_v60  ;;  %v1817_v63 = vsel %vm63_vm0, %v1815_v60, %v1813_v57 }
 0x2c0   :  { %v1818_v5 = vmul.f32 %v1817_v63, %v3885_v14  ;;  %v1819_v6 = vmul.f32 %v1816_v61, %v3888_v15  ;;  %v3567_v61 = vld [vmem:[%s4484_s3 + $0xc] sm:$0xf] }
 0x2c2   :  { %3557 = vmatprep.subr.msk.mxu0 %vm87_vm1, %v1819_v6  ;;  %v2627_v11 = vpop.permute.xlu1 %2626 }
 0x2c3   :  { %3558 = vmatpush1.msk.msra.mxu0 %vm87_vm1, %v1818_v5 }
 0x2c4   :  { %3559 = vmatmul.mubr.msk.f32.vlgmr.msra.gmra.mrb[2].mxu0 %vm83_vm3, %v3556_v10 }
 0x2c5   :  { %1975 = vmatprep.mubr.f32.mxu0 %v3730_v4 }
 0x2c6   :  { %v2629_v13 = vpop.permute.xlu1 %2628 }
 0x2c7   :  { %v2630_v17 = vsel %vm63_vm0, %v2627_v11, %v2629_v13  ;;  %v2631_v20 = vsel %vm63_vm0, %v2629_v13, %v2627_v11 }
 0x2c8   :  { %v2632_v21 = vmul.f32 %v2631_v20, %v3885_v14  ;;  %v2633_v23 = vmul.f32 %v2630_v17, %v3888_v15  ;;  %v2075_v14 = vpop.permute.xlu0 %2074 }
 0x2ca   :  { %3591 = vmatprep.subr.msk.mxu1 %vm87_vm1, %v2633_v23  ;;  %v1804_v25 = vpop.permute.xlu1 %1803 }
 0x2cb   :  { %3592 = vmatpush1.msk.msra.mxu1 %vm87_vm1, %v2632_v21 }
 0x2cc   :  { %3593 = vmatmul.mubr.msk.f32.vlgmr.msra.gmra.mrb[2].mxu1 %vm83_vm3, %v3556_v10  ;;  %v2876_v8 = vpop.permute.xlu0 %2875 }
 0x2cd   :  { %2781 = vmatprep.mubr.f32.mxu1 %v3730_v4 }
 0x2ce   :  { %v1806_v9 = vpop.permute.xlu1 %1805 }
 0x2cf   :  { %v1807_v27 = vsel %vm41_vm2, %v1804_v25, %v1806_v9  ;;  %v1808_v29 = vsel %vm41_vm2, %v1806_v9, %v1804_v25 }
 0x2d0   :  { %v1809_v15 = vmul.f32 %v1808_v29, %v3892_v18  ;;  %v1810_v30 = vmul.f32 %v1807_v27, %v3895_v19  ;;  %v2251_v47 = vpop.permute.xlu0 %2250 }
 0x2d2   :  { %3560 = vmatprep.subr.msk.mxu0 %vm87_vm1, %v1810_v30  ;;  %v2619_v32 = vpop.permute.xlu1 %2618 }
 0x2d3   :  { %3561 = vmatpush1.msk.msra.mxu0 %vm87_vm1, %v1809_v15 }
 0x2d4   :  { %3562 = vmatmul.mubr.msk.f32.vlgmr.msra.gmra.mrb[2].mxu0 %vm83_vm3, %v1811_v31  ;;  %v3042_v37 = vpop.permute.xlu0 %3041 }
 0x2d5   :  { %2065 = vmatprep.mubr.f32.mxu0 %v3730_v4 }
 0x2d6   :  { %v2621_v33 = vpop.permute.xlu1 %2620 }
 0x2d7   :  { %v2622_v1 = vsel %vm41_vm2, %v2619_v32, %v2621_v33  ;;  %v2623_v34 = vsel %vm41_vm2, %v2621_v33, %v2619_v32 }
 0x2d8   :  { %v2624_v0 = vmul.f32 %v2623_v34, %v3892_v18  ;;  %v2625_v36 = vmul.f32 %v2622_v1, %v3895_v19  ;;  %v3563_v18 = vld [vmem:[%s4484_s3 + $0x8] sm:$0xf]  ;;  %v2343_v10 = vpop.permute.xlu0 %2342 }
 0x2da   :  { %3594 = vmatprep.subr.msk.mxu1 %vm87_vm1, %v2625_v36  ;;  %v1985_v39 = vpop.permute.xlu1 %1984  ;;  %v3579_v36 = vld [vmem:[%s4484_s3 + $0x18] sm:$0xf] }
 0x2db   :  { %v1986_v40 = vsel %vm249_vm4, %v1983_v12, %v1985_v39  ;;  %v1987_v46 = vsel %vm249_vm4, %v1985_v39, %v1983_v12  ;;  %3595 = vmatpush1.msk.msra.mxu1 %vm87_vm1, %v2624_v0 }
 0x2dc   :  { %v1988_v48 = vmul.f32 %v1987_v46, %v3939_v42  ;;  %v1989_v49 = vmul.f32 %v1986_v40, %v3942_v43  ;;  %3596 = vmatmul.mubr.msk.f32.vlgmr.msra.gmra.mrb[2].mxu1 %vm83_vm3, %v1811_v31 }
 0x2dd   :  { %2866 = vmatprep.mubr.f32.mxu1 %v3730_v4 }
 0x2de   :  { %3564 = vmatprep.subr.msk.mxu0 %vm87_vm1, %v1989_v49  ;;  %v2791_v19 = vpop.permute.xlu1 %2790 }
 0x2df   :  { %v2792_v50 = vsel %vm249_vm4, %v2789_v24, %v2791_v19  ;;  %v2793_v51 = vsel %vm249_vm4, %v2791_v19, %v2789_v24  ;;  %3565 = vmatpush1.msk.msra.mxu0 %vm87_vm1, %v1988_v48 }
 0x2e0   :  { %v2794_v53 = vmul.f32 %v2793_v51, %v3939_v42  ;;  %v2795_v54 = vmul.f32 %v2792_v50, %v3942_v43  ;;  %3566 = vmatmul.mubr.msk.f32.vlgmr.msra.gmra.mrb[2].mxu0 %vm83_vm3, %v3563_v18 }
 0x2e1   :  { %2157 = vmatprep.mubr.f32.mxu0 %v3730_v4 }
 0x2e2   :  { %3597 = vmatprep.subr.msk.mxu1 %vm87_vm1, %v2795_v54  ;;  %v2077_v45 = vpop.permute.xlu1 %2076 }
 0x2e3   :  { %v2078_v57 = vsel %vm355_vm5, %v2075_v14, %v2077_v45  ;;  %v2079_v60 = vsel %vm355_vm5, %v2077_v45, %v2075_v14  ;;  %3598 = vmatpush1.msk.msra.mxu1 %vm87_vm1, %v2794_v53  ;;  %v3575_v14 = vld [vmem:[%s4484_s3 + $0x14] sm:$0xf] }
 0x2e4   :  { %v2080_v42 = vmul.f32 %v2079_v60, %v3972_v58  ;;  %v2081_v43 = vmul.f32 %v2078_v57, %v3975_v59  ;;  %3599 = vmatmul.mubr.msk.f32.vlgmr.msra.gmra.mrb[2].mxu1 %vm83_vm3, %v3563_v18 }
 0x2e5   :  { %2953 = vmatprep.mubr.f32.mxu1 %v3730_v4 }
 0x2e6   :  { %3568 = vmatprep.subr.msk.mxu0 %vm87_vm1, %v2081_v43  ;;  %v2878_v63 = vpop.permute.xlu1 %2877 }
 0x2e7   :  { %v2879_v5 = vsel %vm355_vm5, %v2876_v8, %v2878_v63  ;;  %v2880_v6 = vsel %vm355_vm5, %v2878_v63, %v2876_v8  ;;  %3569 = vmatpush1.msk.msra.mxu0 %vm87_vm1, %v2080_v42 }
 0x2e8   :  { %v2881_v11 = vmul.f32 %v2880_v6, %v3972_v58  ;;  %v2882_v12 = vmul.f32 %v2879_v5, %v3975_v59  ;;  %3570 = vmatmul.mubr.msk.f32.vlgmr.msra.gmra.mrb[2].mxu0 %vm83_vm3, %v3567_v61  ;;  %3572 = vmatprep.subr.msk.mxu0 %vm87_vm1, %v4180_v38  ;;  %v3129_v38 = vpop.permute.xlu0 %3128 }
 0x2e9   :  { %3573 = vmatpush1.msk.msra.mxu0 %vm87_vm1, %v4174_v55  ;;  %2241 = vmatprep.mubr.f32.mxu0 %v3730_v4  ;;  %v3571_v55 = vld [vmem:[%s4484_s3 + $0x10] sm:$0xf] }
 0x2ea   :  { %3600 = vmatprep.subr.msk.mxu1 %vm87_vm1, %v2882_v12  ;;  %v2253_v13 = vpop.permute.xlu1 %2252 }
 0x2eb   :  { %v2255_v17 = vsel %vm543_vm6, %v2253_v13, %v2251_v47  ;;  %3601 = vmatpush1.msk.msra.mxu1 %vm87_vm1, %v2881_v11  ;;  %v2254_v58 = vsel %vm543_vm6, %v2251_v47, %v2253_v13 }
 0x2ec   :  { %v2257_v59 = vmul.f32 %v2255_v17, %v4007_v22  ;;  %3602 = vmatmul.mubr.msk.f32.vlgmr.msra.gmra.mrb[2].mxu1 %vm83_vm3, %v3567_v61  ;;  %3603 = vmatprep.subr.msk.mxu1 %vm87_vm1, %v4192_v56  ;;  %v2256_v21 = vmul.f32 %v2254_v58, %v4022_v28  ;;  %v2435_v27 = vpop.permute.xlu0 %2434 }
 0x2ed   :  { %3604 = vmatpush1.msk.msra.mxu1 %vm87_vm1, %v4182_v41  ;;  %3032 = vmatprep.mubr.f32.mxu1 %v3730_v4 }
 0x2ee   :  { %3576 = vmatprep.subr.msk.mxu0 %vm87_vm1, %v2257_v59  ;;  %v3044_v20 = vpop.permute.xlu1 %3043 }
 0x2ef   :  { %v3046_v23 = vsel %vm543_vm6, %v3044_v20, %v3042_v37  ;;  %v3045_v56 = vsel %vm543_vm6, %v3042_v37, %v3044_v20 }
 0x2f0   :  { %v3048_v41 = vmul.f32 %v3046_v23, %v4007_v22  ;;  %3574 = vmatmul.mubr.msk.f32.vlgmr.msra.gmra.mrb[2].mxu0 %vm83_vm3, %v3571_v55  ;;  %v3047_v25 = vmul.f32 %v3045_v56, %v4022_v28  ;;  %v3216_v8 = vpop.permute.xlu0 %3215  ;;  %v3433_v23 = vld [vmem:[%s4487_s6] sm:$0xf] }
 0x2f1   :  { %3577 = vmatpush1.msk.msra.mxu0 %vm87_vm1, %v2256_v21  ;;  %2333 = vmatprep.mubr.f32.mxu0 %v3730_v4  ;;  %v3443_v56 = vld [vmem:[%s4488_s7] sm:$0xf] }
 0x2f2   :  { %3606 = vmatprep.subr.msk.mxu1 %vm87_vm1, %v3048_v41  ;;  %v2345_v24 = vpop.permute.xlu1 %2344 }
 0x2f3   :  { %v2347_v9 = vsel %vm649_vm7, %v2345_v24, %v2343_v10  ;;  %v2346_v29 = vsel %vm649_vm7, %v2343_v10, %v2345_v24 }
 0x2f4   :  { %v2349_v22 = vmul.f32 %v2347_v9, %v4043_v35  ;;  %3605 = vmatmul.mubr.msk.f32.vlgmr.msra.gmra.mrb[2].mxu1 %vm83_vm3, %v3571_v55  ;;  %v2348_v15 = vmul.f32 %v2346_v29, %v4058_v44  ;;  %v2527_v46 = vpop.permute.xlu0 %2526 }
 0x2f5   :  { %3607 = vmatpush1.msk.msra.mxu1 %vm87_vm1, %v3047_v25  ;;  %3119 = vmatprep.mubr.f32.mxu1 %v3730_v4 }
 0x2f6   :  { %3580 = vmatprep.subr.msk.mxu0 %vm87_vm1, %v2349_v22  ;;  %v3131_v28 = vpop.permute.xlu1 %3130 }
 0x2f7   :  { %v3133_v30 = vsel %vm649_vm7, %v3131_v28, %v3129_v38  ;;  %v3132_v31 = vsel %vm649_vm7, %v3129_v38, %v3131_v28 }
 0x2f8   :  { %v3135_v32 = vmul.f32 %v3133_v30, %v4043_v35  ;;  %3578 = vmatmul.mubr.msk.f32.vlgmr.msra.gmra.mrb[2].mxu0 %vm83_vm3, %v3575_v14  ;;  %v3134_v1 = vmul.f32 %v3132_v31, %v4058_v44  ;;  %v3303_v53 = vpop.permute.xlu0 %3302 }
 0x2f9   :  { %3581 = vmatpush1.msk.msra.mxu0 %vm87_vm1, %v2348_v15  ;;  %2425 = vmatprep.mubr.f32.mxu0 %v3730_v4 }
 0x2fa   :  { %3609 = vmatprep.subr.msk.mxu1 %vm87_vm1, %v3135_v32  ;;  %v2437_v33 = vpop.permute.xlu1 %2436 }
 0x2fb   :  { %v2439_v34 = vsel %vm755_vm8, %v2437_v33, %v2435_v27  ;;  %v2438_v0 = vsel %vm755_vm8, %v2435_v27, %v2437_v33 }
 0x2fc   :  { %v2441_v35 = vmul.f32 %v2439_v34, %v4076_v52  ;;  %3608 = vmatmul.mubr.msk.f32.vlgmr.msra.gmra.mrb[2].mxu1 %vm83_vm3, %v3575_v14  ;;  %v2440_v39 = vmul.f32 %v2438_v0, %v4091_v62 }
 0x2fd   :  { %3610 = vmatpush1.msk.msra.mxu1 %vm87_vm1, %v3134_v1  ;;  %3206 = vmatprep.mubr.f32.mxu1 %v3730_v4 }
 0x2fe   :  { %3584 = vmatprep.subr.msk.mxu0 %vm87_vm1, %v2441_v35  ;;  %v3218_v44 = vpop.permute.xlu1 %3217 }
 0x2ff   :  { %v3220_v40 = vsel %vm755_vm8, %v3218_v44, %v3216_v8  ;;  %v3219_v47 = vsel %vm755_vm8, %v3216_v8, %v3218_v44 }
 0x300   :  { %v3222_v48 = vmul.f32 %v3220_v40, %v4076_v52  ;;  %3582 = vmatmul.mubr.msk.f32.vlgmr.msra.gmra.mrb[2].mxu0 %vm83_vm3, %v3579_v36  ;;  %v3221_v18 = vmul.f32 %v3219_v47, %v4091_v62  ;;  %v3583_v52 = vld [vmem:[%s4484_s3 + $0x1c] sm:$0xf] }
 0x301   :  { %3585 = vmatpush1.msk.msra.mxu0 %vm87_vm1, %v2440_v39  ;;  %2517 = vmatprep.mubr.f32.mxu0 %v3730_v4 }
 0x302   :  { %3612 = vmatprep.subr.msk.mxu1 %vm87_vm1, %v3222_v48  ;;  %v2529_v49 = vpop.permute.xlu1 %2528 }
 0x303   :  { %v2531_v19 = vsel %vm861_vm9, %v2529_v49, %v2527_v46  ;;  %v2530_v50 = vsel %vm861_vm9, %v2527_v46, %v2529_v49 }
 0x304   :  { %v2533_v51 = vmul.f32 %v2531_v19, %v4109_v16  ;;  %3611 = vmatmul.mubr.msk.f32.vlgmr.msra.gmra.mrb[2].mxu1 %vm83_vm3, %v3579_v36  ;;  %v2532_v54 = vmul.f32 %v2530_v50, %v4124_v26 }
 0x305   :  { %3613 = vmatpush1.msk.msra.mxu1 %vm87_vm1, %v3221_v18  ;;  %3293 = vmatprep.mubr.f32.mxu1 %v3730_v4 }
 0x306   :  { %3588 = vmatprep.subr.msk.mxu0 %vm87_vm1, %v2533_v51  ;;  %v3305_v62 = vpop.permute.xlu1 %3304 }
 0x307   :  { %v3307_v37 = vsel %vm861_vm9, %v3305_v62, %v3303_v53  ;;  %v3306_v45 = vsel %vm861_vm9, %v3303_v53, %v3305_v62 }
 0x308   :  { %v3309_v57 = vmul.f32 %v3307_v37, %v4109_v16  ;;  %3586 = vmatmul.mubr.msk.f32.vlgmr.msra.gmra.mrb[2].mxu0 %vm83_vm3, %v3583_v52  ;;  %v3308_v60 = vmul.f32 %v3306_v45, %v4124_v26 }
 0x309   :  { %3589 = vmatpush1.msk.msra.mxu0 %vm87_vm1, %v2532_v54  ;;  %2609 = vmatprep.mubr.f32.mxu0 %v3730_v4  ;;  %v3703_v54 = vld [vmem:[%s4481_s0] sm:$0xff] }
 0x30a   :  { %3615 = vmatprep.subr.msk.mxu1 %vm87_vm1, %v3309_v57  ;;  %v3704_v57 = vld [vmem:[%s4481_s0 + $0x8] sm:$0xff] }
 0x30c   :  { %3614 = vmatmul.mubr.msk.f32.vlgmr.msra.gmra.mrb[2].mxu1 %vm83_vm3, %v3583_v52 }
 0x30d   :  { %3616 = vmatpush1.msk.msra.mxu1 %vm87_vm1, %v3308_v60  ;;  %3380 = vmatprep.mubr.f32.mxu1 %v3730_v4 }
 0x310   :  { %3590 = vmatmul.mubr.msk.f32.vlgmr.msra.gmra.mrb[2].mxu0 %vm83_vm3, %v3587_v7 }
 0x314   :  { %3617 = vmatmul.mubr.msk.f32.vlgmr.msra.gmra.mrb[2].mxu1 %vm83_vm3, %v3587_v7 }
 0x3e3   :  { %v2611_v16 = vpop.f32.mrb[2].mxu0 }
 0x3e4   :  { %v3402_v42 = vmul.f32 %v2611_v16, %v2611_v16  ;;  %v2613_v43 = vpop.f32.mrb[3].mxu0  ;;  %v3389_v61 = vsel %vm87_vm1, %v2611_v16, 0.0 }
 0x3e5   :  { %v3390_v26 = vsel %vm87_vm1, %v2613_v43, 0.0  ;;  %v3403_v63 = vmul.f32 %v2613_v43, %v2613_v43 }
 0x3e6   :  { %v3391_v5 = vadd.f32 %v3390_v26, %v3389_v61  ;;  %v3406_v6 = vsel %vm87_vm1, %v3402_v42, 0.0 }
 0x3e7   :  { %v3382_v10 = vpop.f32.mrb[2].mxu1  ;;  %v3407_v11 = vsel %vm87_vm1, %v3403_v63, 0.0 }
 0x3e8   :  { %v3404_v12 = vmul.f32 %v3382_v10, %v3382_v10  ;;  %3392 = vadd.xlane.f32.xlu0 %v3391_v5  ;;  %v3384_v4 = vpop.f32.mrb[3].mxu1  ;;  %v3408_v13 = vadd.f32 %v3407_v11, %v3406_v6  ;;  %v3394_v17 = vsel %vm87_vm1, %v3382_v10, 0.0 }
 0x3e9   :  { %v3395_v58 = vsel %vm87_vm1, %v3384_v4, 0.0  ;;  %v3405_v59 = vmul.f32 %v3384_v4, %v3384_v4 }
 0x3ea   :  { %v3396_v55 = vadd.f32 %v3395_v58, %v3394_v17  ;;  %v3411_v38 = vsel %vm87_vm1, %v3404_v12, 0.0 }
 0x3eb   :  { %v3412_v20 = vsel %vm87_vm1, %v3405_v59, 0.0 }
 0x3ec   :  { %3409 = vadd.xlane.f32.xlu0 %v3408_v13  ;;  %3397 = vadd.xlane.f32.xlu1 %v3396_v55  ;;  %v3413_v21 = vadd.f32 %v3412_v20, %v3411_v38 }
 0x3f0   :  { %3414 = vadd.xlane.f32.xlu0 %v3413_v21 }
 0x3fd   :  { %3436 = vperm.xlu1 %3695, %v3433_v23  }
 0x406   :  { %3446 = vperm.xlu0 %3696, %v3443_v56  }
 0x475   :  { %v3393_v41 = vpop.xlane.xlu0 %3392 }
 0x476   :  { %v3399_v9 = vsel %vm87_vm1, %v3393_v41, 0.0 }
 0x479   :  { %v3410_v24 = vpop.xlane.xlu0 %3409  ;;  %v3398_v25 = vpop.xlane.xlu1 %3397 }
 0x47a   :  { %v3400_v27 = vsel %vm87_vm1, %v3398_v25, 0.0  ;;  %v3416_v28 = vsel %vm87_vm1, %v3410_v24, 0.0 }
 0x47b   :  { %v3401_v29 = vadd.f32 %v3400_v27, %v3399_v9 }
 0x47d   :  { %v3419_v22 = vmul.f32 0.001953125, %v3401_v29  ;;  %v3415_v14 = vpop.xlane.xlu0 %3414  ;;  %v3437_v47 = vpop.permute.xlu1 %3436 }
 0x47e   :  { %v3417_v15 = vsel %vm87_vm1, %v3415_v14, 0.0 }
 0x47f   :  { %v3418_v30 = vadd.f32 %v3417_v15, %v3416_v28  ;;  %v3421_v32 = vmul.f32 %v3419_v22, %v3419_v22  ;;  %v3423_v1 = vsub.f32 %v2611_v16, %v3419_v22  ;;  %v3424_v34 = vsub.f32 %v2613_v43, %v3419_v22 }
 0x480   :  { %v3425_v0 = vsub.f32 %v3382_v10, %v3419_v22  ;;  %v3426_v35 = vsub.f32 %v3384_v4, %v3419_v22 }
 0x481   :  { %v3420_v31 = vmul.f32 0.001953125, %v3418_v30 }
 0x483   :  { %v3422_v8 = vsub.f32 %v3420_v31, %v3421_v32 }
 0x485   :  { %v3427_v33 = vadd.f32 1e-05, %v3422_v8  ;;  %v3447_v50 = vpop.permute.xlu0 %3446 }
 0x487   :  { %3701 = vrsqrt.f32 %v3427_v33 }
 0x491   :  { %v3702_v36 = vpop.eup %3701 }
 0x492   :  { %v3429_v44 = vmul.f32 %v3702_v36, %v3423_v1  ;;  %v3430_v39 = vmul.f32 %v3702_v36, %v3424_v34  ;;  %v3431_v40 = vmul.f32 %v3702_v36, %v3425_v0  ;;  %v3432_v46 = vmul.f32 %v3702_v36, %v3426_v35 }
 0x494   :  { %v3439_v48 = vmul.f32 %v3437_v47, %v3429_v44  ;;  %v3440_v49 = vmul.f32 %v3437_v47, %v3430_v39  ;;  %v3441_v18 = vmul.f32 %v3437_v47, %v3431_v40  ;;  %v3442_v19 = vmul.f32 %v3437_v47, %v3432_v46 }
 0x496   :  { %v3449_v51 = vadd.f32 %v3447_v50, %v3439_v48  ;;  %v3450_v52 = vadd.f32 %v3447_v50, %v3440_v49  ;;  %v3451_v53 = vadd.f32 %v3447_v50, %v3441_v18  ;;  %v3452_v62 = vadd.f32 %v3447_v50, %v3442_v19 }
 0x498   :  { %v3453_v37 = vadd.f32 %v3703_v54, %v3449_v51  ;;  %v3454_v45 = vadd.f32 %v3450_v52, %v3807_v3  ;;  %v3455_v60 = vadd.f32 %v3704_v57, %v3451_v53  ;;  %v3456_v7 = vadd.f32 %v3452_v62, %v3803_v2 }
 0x49a   :  { %v3457_v16 = vmax.f32 %v3453_v37, 0.0  ;;  %v3458_v42 = vmax.f32 %v3454_v45, 0.0  ;;  %v3459_v43 = vmax.f32 %v3455_v60, 0.0  ;;  %v3460_v61 = vmax.f32 %v3456_v7, 0.0 }
 0x49c   :  { %v3465_v26 = vcombine.low %v3457_v16, %v3458_v42  ;;  %v3466_v63 = vcombine.low %v3459_v43, %v3460_v61 }
 0x49e   :  { %3469 = vst [vmem:[#allocation2] sm:$0xff] %v3465_v26  ;;  %3470 = vst [vmem:[#allocation2 + $0x8] sm:$0xff] %v3466_v63 }
 0x49f   :  { %3716 = shalt.err (!%p3713_p4)
}
 0x4a0   :  { %s3717_s5 = scalar_lea.hbm %s4489_s8, 256 }
 0x4a1   :  { %p3718_p5 = scmp.ne.s32.totalorder %s4489_s8, %s3717_s5  ;;  %p3721_p6 = scmp.lt.u32.totalorder %s3717_s5, %s4489_s8 }
 0x4a3   :  { %p3723_p7 = pnand %p3721_p6, %p3718_p5 }
 0x4a5   :  { %3726 = shalt.err (!%p3723_p7)
}
 0x4a6   :  { %s3740_s13 = smov 128   ;;  %s3741_s14 = smov 8  }
 0x4a7   :  { %3482 = dma.vmem_to_hbm [thread:$0]  %s3477_s23, 256, %s4489_s8, [#allocation3], %s3740_s13, %s3740_s13, %s3741_s14  }
 0x4a8   :  { %3727 = dma.done.wait [#allocation3], 256  }
 0x4a9   :  { %3728 = vsyncadd [#allocation3], 4294967040 }
 0x4aa   :  { %3486 = vsyncpa [#allocation3], 1 }

</bundles_post_ra>
